<compile_context>
chip_gen: v5e
topology: v5e:2x2
jax: 0.10.0
libtpu: 0.0.40
codegen_flags: <defaults>
</compile_context>

<pallas_src>
import functools

import jax
import jax.numpy as jnp
from jax import lax
from jax.experimental import pallas as pl
from jax.experimental.pallas import tpu as pltpu

EPS = 1e-15
BN_EPS = 1e-5
VMEM_LIMIT_BYTES = 32 * 1024 * 1024  # explicit, safe on v5e/v6e/v7x


def _pick_tile(n, max_tile, multiple):
    """Largest tile <= max_tile that divides n and is a multiple of `multiple`;
    falls back to the whole axis (always legal: full-dim blocks).
    TODO(synk): replace the full-axis fallback with a padded/masked last tile
    so awkward N cannot blow VMEM on v7x (64 MiB physical)."""
    if n <= max_tile:
        return n
    t = (max_tile // multiple) * multiple
    while t >= multiple:
        if n % t == 0:
            return t
        t -= multiple
    return n


# ---------------------------------------------------------------------------
# Fused projection head: Linear -> BatchNorm1d -> ELU -> Linear -> L2-normalise
# One pallas_call, grid=(pass, row-tile); h lives in persistent VMEM scratch.
# ---------------------------------------------------------------------------
def _proj_fused_kernel(z_ref, w1t_ref, b1_ref, gamma_ref, beta_ref, w2t_ref,
                       b2_ref, out_ref, h_scr, stat_scr, *, n_rows, tn):
    p = pl.program_id(0)          # 0: matmul + batch stats; 1: normalise + out
    k = pl.program_id(1)          # row tile
    row0 = pl.multiple_of(k * tn, 8)

    @pl.when((p == 0) & (k == 0))
    def _():
        stat_scr[...] = jnp.zeros_like(stat_scr)

    @pl.when(p == 0)
    def _():
        h = jnp.dot(z_ref[...], w1t_ref[...],
                    preferred_element_type=jnp.float32) + b1_ref[...]   # (tn, P)
        h_scr[pl.ds(row0, tn), :] = h
        # Single full-block accumulate (no partial-sublane RMW stores).
        stat_scr[...] += jnp.concatenate(
            [jnp.sum(h, axis=0, keepdims=True),
             jnp.sum(h * h, axis=0, keepdims=True)], axis=0)

    @pl.when(p == 1)
    def _():
        inv_n = 1.0 / n_rows
        mean = stat_scr[0:1, :] * inv_n                                 # (1, P)
        var = stat_scr[1:2, :] * inv_n - mean * mean                    # biased (BN training mode)
        rstd = lax.rsqrt(var + BN_EPS)
        # Fold gamma/rstd/mean/beta into one scale & shift.
        scale = gamma_ref[...] * rstd
        shift = beta_ref[...] - mean * scale
        h = h_scr[pl.ds(row0, tn), :] * scale + shift
        h = jnp.where(h > 0, h, jnp.exp(h) - 1.0)                       # ELU(alpha=1)
        y = jnp.dot(h, w2t_ref[...],
                    preferred_element_type=jnp.float32) + b2_ref[...]
        # L2 row-normalisation folded here so the sim kernel is just exp(dot/tau).
        norm = jnp.sqrt(jnp.sum(y * y, axis=-1, keepdims=True))
        y = y / jnp.maximum(norm, 1e-30)                                # guard zero rows
        out_ref[...] = y.astype(out_ref.dtype)


def project(z, w1t, b1, gamma, beta, w2t, b2, *, max_tile=512):
    """z: (N, H); w1t: (H, P); w2t: (P, P); vectors are (P,).
    Returns row-L2-normalised projections as (N, P) bfloat16."""
    N, H = z.shape
    P = w1t.shape[1]
    b1 = b1.reshape(1, P).astype(jnp.float32)
    gamma = gamma.reshape(1, P).astype(jnp.float32)
    beta = beta.reshape(1, P).astype(jnp.float32)
    b2 = b2.reshape(1, P).astype(jnp.float32)

    tn = _pick_tile(N, max_tile, 8)
    nk = N // tn

    kernel = functools.partial(_proj_fused_kernel, n_rows=float(N), tn=tn)
    return pl.pallas_call(
        kernel,
        out_shape=jax.ShapeDtypeStruct((N, P), jnp.bfloat16),
        grid=(2, nk),
        in_specs=[
            # z: real tiles during pass 0; pinned to the last tile during pass 1
            # (index unchanged at the pass transition -> no wasted DMA).
            pl.BlockSpec((tn, H), lambda p, k: (k * (1 - p) + (nk - 1) * p, 0)),
            pl.BlockSpec((H, P), lambda p, k: (0, 0)),
            pl.BlockSpec((1, P), lambda p, k: (0, 0)),
            pl.BlockSpec((1, P), lambda p, k: (0, 0)),
            pl.BlockSpec((1, P), lambda p, k: (0, 0)),
            pl.BlockSpec((P, P), lambda p, k: (0, 0)),
            pl.BlockSpec((1, P), lambda p, k: (0, 0)),
        ],
        # out: pinned to block 0 during pass 0 (never written there -> never
        # flushed); real tiles during pass 1.
        out_specs=pl.BlockSpec((tn, P), lambda p, k: (k * p, 0)),
        scratch_shapes=[pltpu.VMEM((N, P), jnp.float32),   # persistent h
                        pltpu.VMEM((2, P), jnp.float32)],  # [sum; sumsq]
        compiler_params=pltpu.CompilerParams(
            dimension_semantics=("arbitrary", "arbitrary"),
            vmem_limit_bytes=VMEM_LIMIT_BYTES),
    )(z, w1t, b1, gamma, beta, w2t, b2)


# ---------------------------------------------------------------------------
# Fused similarity partial sums (both directions), tiled over N columns with a
# leading 'parallel' column-slice axis (shards across v7x's 2 TensorCores).
# ---------------------------------------------------------------------------
def _contrast_sim_kernel(zp1_ref, zp2_ref, z1_ref, z2_ref, pos_ref, out_ref,
                         *, inv_tau):
    k = pl.program_id(1)

    @pl.when(k == 0)
    def _():
        out_ref[...] = jnp.zeros_like(out_ref)

    pos = pos_ref[...].astype(jnp.float32)                       # (S, TN)

    def direction(sel_ref, all_ref):
        # Rows are pre-L2-normalised bf16, so sim = exp(cos/tau): no per-tile
        # norms, no (TN,1)->(1,TN) relayout, no (S,TN) reciprocal.
        dot = lax.dot_general(sel_ref[...], all_ref[...],
                              dimension_numbers=(((1,), (1,)), ((), ())),
                              preferred_element_type=jnp.float32)  # (S, TN)
        sim = jnp.exp(dot * inv_tau)
        num = jnp.sum(sim * pos, axis=-1, keepdims=True)           # (S, 1)
        den = jnp.sum(sim, axis=-1, keepdims=True)                 # (S, 1)
        return num, den

    n1, d1 = direction(zp1_ref, z2_ref)   # sim(zp1[seed], zp2)
    n2, d2 = direction(zp2_ref, z1_ref)   # sim(zp2[seed], zp1)
    out_ref[...] += jnp.concatenate([n1, d1, n2, d2], axis=-1)[None]   # (1,S,4)


def contrast_partial_sums(zp1_sel, zp2_sel, z_proj_1, z_proj_2, pos, tau,
                          *, max_n_tile=1024):
    """Returns per-slice partial [num1, den1, num2, den2] sums: (n_slices, S, 4)."""
    S, P = zp1_sel.shape
    N = z_proj_1.shape[0]
    tn = _pick_tile(N, max_n_tile, 128)       # lane-dense column tiles
    nk = N // tn
    n_slices = 2 if (nk % 2 == 0 and nk >= 2) else 1
    kps = nk // n_slices

    kernel = functools.partial(_contrast_sim_kernel, inv_tau=float(1.0 / tau))
    return pl.pallas_call(
        kernel,
        out_shape=jax.ShapeDtypeStruct((n_slices, S, 4), jnp.float32),
        grid=(n_slices, kps),
        in_specs=[
            pl.BlockSpec((S, P), lambda c, k: (0, 0)),                  # zp1[seed] (bf16)
            pl.BlockSpec((S, P), lambda c, k: (0, 0)),                  # zp2[seed] (bf16)
            pl.BlockSpec((tn, P), lambda c, k: (c * kps + k, 0)),       # z_proj_1 tile
            pl.BlockSpec((tn, P), lambda c, k: (c * kps + k, 0)),       # z_proj_2 tile
            pl.BlockSpec((S, tn), lambda c, k: (0, c * kps + k)),       # pos tile (int8)
        ],
        out_specs=pl.BlockSpec((1, S, 4), lambda c, k: (c, 0, 0)),
        compiler_params=pltpu.CompilerParams(
            dimension_semantics=("parallel", "arbitrary"),
            vmem_limit_bytes=VMEM_LIMIT_BYTES),
    )(zp1_sel, zp2_sel, z_proj_1, z_proj_2, pos)


# ---------------------------------------------------------------------------
# Module wrapper
# ---------------------------------------------------------------------------
def contrast_forward(params, z_1, z_2, pos, seed, tau,
                     *, max_row_tile=512, max_n_tile=1024):
    p1, p2 = params["proj_1"], params["proj_2"]
    # TODO(synk): on v7x the two heads could be batched on a leading 'parallel'
    # grid axis (one head per TensorCore); kept as two fused calls because
    # stacking z_1/z_2 in HBM costs about as much traffic as it saves when H~=P.
    z_proj_1 = project(z_1, *p1, max_tile=max_row_tile)
    z_proj_2 = project(z_2, *p2, max_tile=max_row_tile)

    # TODO(synk): fold this seed-row gather into the sim kernel via
    # PrefetchScalarGridSpec + pl.Element row blocks (minor for small S).
    zp1_sel = z_proj_1[seed]
    zp2_sel = z_proj_2[seed]

    parts = contrast_partial_sums(zp1_sel, zp2_sel, z_proj_1, z_proj_2, pos,
                                  tau, max_n_tile=max_n_tile)
    parts = jnp.sum(parts, axis=0)                       # (S, 4) tiny combine
    num1, den1 = parts[:, 0], parts[:, 1]
    num2, den2 = parts[:, 2], parts[:, 3]
    # Exact divides in the once-executed epilogue.
    l1 = jnp.mean(-jnp.log(num1 / (den1 + EPS)))
    l2 = jnp.mean(-jnp.log(num2 / (den2 + EPS)))
    return 0.5 * (l1 + l2)


def init_params(key, hidden_dim, project_dim):
    """Deterministic synthetic init; Linear weights ~ kaiming_normal (fan_in)."""
    def head(k):
        k1, k2, k3, k4 = jax.random.split(k, 4)
        std1 = (2.0 / hidden_dim) ** 0.5
        std2 = (2.0 / project_dim) ** 0.5
        w1t = jax.random.normal(k1, (hidden_dim, project_dim), jnp.float32) * std1
        b1 = jax.random.normal(k2, (project_dim,), jnp.float32) * 0.01
        gamma = jnp.ones((project_dim,), jnp.float32)
        beta = jnp.zeros((project_dim,), jnp.float32)
        w2t = jax.random.normal(k3, (project_dim, project_dim), jnp.float32) * std2
        b2 = jax.random.normal(k4, (project_dim,), jnp.float32) * 0.01
        return (w1t, b1, gamma, beta, w2t, b2)

    ka, kb = jax.random.split(key)
    return {"proj_1": head(ka), "proj_2": head(kb)}


# Pure-JAX reference (mirrors the PyTorch module exactly) for a sanity check.
def _reference_forward(params, z_1, z_2, pos, seed, tau):
    def proj(z, w1t, b1, gamma, beta, w2t, b2):
        h = z @ w1t + b1
        mean = h.mean(axis=0, keepdims=True)
        var = ((h - mean) ** 2).mean(axis=0, keepdims=True)
        h = (h - mean) / jnp.sqrt(var + BN_EPS) * gamma + beta
        h = jnp.where(h > 0, h, jnp.exp(h) - 1.0)
        return h @ w2t + b2

    zp1 = proj(z_1, *params["proj_1"])
    zp2 = proj(z_2, *params["proj_2"])
    posf = pos.astype(jnp.float32)

    def sim(a, b):
        na = jnp.linalg.norm(a, axis=-1, keepdims=True)
        nb = jnp.linalg.norm(b, axis=-1, keepdims=True)
        return jnp.exp((a @ b.T) / (na @ nb.T + EPS) / tau)

    m1 = sim(zp1[seed], zp2)
    m2 = sim(zp2[seed], zp1)
    m1 = m1 / (m1.sum(axis=1, keepdims=True) + EPS)
    m2 = m2 / (m2.sum(axis=1, keepdims=True) + EPS)
    l1 = -jnp.log((m1 * posf).sum(axis=-1)).mean()
    l2 = -jnp.log((m2 * posf).sum(axis=-1)).mean()
    return (l1 + l2) / 2


if __name__ == "__main__":
    N = 512          # number of nodes (BatchNorm1d batch)
    HIDDEN = 128     # lane-dense (multiple of 128)
    PROJECT = 128
    S = 8            # len(seed)
    TAU = 0.8

    key = jax.random.PRNGKey(0)
    k_param, k_z1, k_z2, k_pos, k_seed = jax.random.split(key, 5)

    params = init_params(k_param, HIDDEN, PROJECT)
    z_1 = jax.random.normal(k_z1, (N, HIDDEN), jnp.float32)
    z_2 = jax.random.normal(k_z2, (N, HIDDEN), jnp.float32)

    seed = jax.random.choice(k_seed, N, shape=(S,), replace=False).astype(jnp.int32)
    # dense positive mask (S, N) as int8; guarantee >=1 positive per row
    pos = (jax.random.uniform(k_pos, (S, N)) > 0.9).astype(jnp.int8)
    pos = pos.at[jnp.arange(S), seed].set(1)

    # Small tiles so both kernels run real multi-step grids:
    # projection: 2 passes x 4 row tiles (fused-BN accumulator path),
    # sim: 2 parallel column slices x 2 accumulation steps each.
    loss = contrast_forward(params, z_1, z_2, pos, seed, TAU,
                            max_row_tile=128, max_n_tile=128)
    loss = jax.block_until_ready(loss)

    ref = _reference_forward(params, z_1, z_2, pos, seed, TAU)
    assert jnp.isfinite(loss), "loss is not finite"
    assert jnp.allclose(loss, ref, rtol=5e-2, atol=5e-2), (loss, ref)
    print("KERNEL_OK")
</pallas_src>

<mosaic_0001>
module attributes {stable_mosaic.version = 11 : i64} {
  func.func @_proj_fused_kernel(%arg0: i32, %arg1: i32, %arg2: memref<128x128xf32, #tpu.memory_space<vmem>>, %arg3: memref<128x128xf32, #tpu.memory_space<vmem>>, %arg4: memref<1x128xf32, #tpu.memory_space<vmem>>, %arg5: memref<1x128xf32, #tpu.memory_space<vmem>>, %arg6: memref<1x128xf32, #tpu.memory_space<vmem>>, %arg7: memref<128x128xf32, #tpu.memory_space<vmem>>, %arg8: memref<1x128xf32, #tpu.memory_space<vmem>>, %arg9: memref<128x128xbf16, #tpu.memory_space<vmem>>, %arg10: memref<512x128xf32, #tpu.memory_space<vmem>>, %arg11: memref<2x128xf32, #tpu.memory_space<vmem>>) attributes {dimension_semantics = [#tpu.dimension_semantics<arbitrary>, #tpu.dimension_semantics<arbitrary>], iteration_bounds = array<i64: 2, 4>, scalar_prefetch = 0 : i64, scratch_operands = 2 : i64, tpu.core_type = #tpu.core_type<tc>, window_params = [{transform_indices = @transform_0, window_bounds = array<i64: 128, 128>}, {pipeline_mode = #tpu.pipeline_mode<synchronous>, transform_indices = @transform_1, window_bounds = array<i64: 128, 128>}, {pipeline_mode = #tpu.pipeline_mode<synchronous>, transform_indices = @transform_2, window_bounds = array<i64: 1, 128>}, {pipeline_mode = #tpu.pipeline_mode<synchronous>, transform_indices = @transform_3, window_bounds = array<i64: 1, 128>}, {pipeline_mode = #tpu.pipeline_mode<synchronous>, transform_indices = @transform_4, window_bounds = array<i64: 1, 128>}, {pipeline_mode = #tpu.pipeline_mode<synchronous>, transform_indices = @transform_5, window_bounds = array<i64: 128, 128>}, {pipeline_mode = #tpu.pipeline_mode<synchronous>, transform_indices = @transform_6, window_bounds = array<i64: 1, 128>}, {transform_indices = @transform_7, window_bounds = array<i64: 128, 128>}]} {
    %c128_i32 = arith.constant 128 : i32
    %0 = arith.muli %arg1, %c128_i32 : i32
    %1 = tpu.assume_multiple %0, 8 : i32
    %c0_i32 = arith.constant 0 : i32
    %2 = arith.cmpi eq, %arg0, %c0_i32 : i32
    %c0_i32_0 = arith.constant 0 : i32
    %3 = arith.cmpi eq, %arg1, %c0_i32_0 : i32
    %4 = arith.andi %2, %3 : i1
    %5 = arith.extui %4 : i1 to i32
    %c0_i32_1 = arith.constant 0 : i32
    %6 = arith.cmpi ne, %5, %c0_i32_1 : i32
    scf.if %6 {
      %cst = arith.constant 0.000000e+00 : f32
      %13 = vector.broadcast %cst : f32 to vector<2x128xf32>
      %c0 = arith.constant 0 : index
      %c0_5 = arith.constant 0 : index
      %14 = vector.load %arg11[%c0, %c0_5] : memref<2x128xf32, #tpu.memory_space<vmem>>, vector<2x128xf32>
      tpu.vector_store %arg11[%c0, %c0_5], %13 {strides = array<i32>} : memref<2x128xf32, #tpu.memory_space<vmem>>, vector<2x128xf32>,
    } else {
    }
    %c0_i32_2 = arith.constant 0 : i32
    %7 = arith.cmpi eq, %arg0, %c0_i32_2 : i32
    %8 = arith.extui %7 : i1 to i32
    %c0_i32_3 = arith.constant 0 : i32
    %9 = arith.cmpi ne, %8, %c0_i32_3 : i32
    scf.if %9 {
      %c0 = arith.constant 0 : index
      %c0_5 = arith.constant 0 : index
      %13 = vector.load %arg2[%c0, %c0_5] : memref<128x128xf32, #tpu.memory_space<vmem>>, vector<128x128xf32>
      %c0_6 = arith.constant 0 : index
      %c0_7 = arith.constant 0 : index
      %14 = vector.load %arg3[%c0_6, %c0_7] : memref<128x128xf32, #tpu.memory_space<vmem>>, vector<128x128xf32>
      %cst = arith.constant dense<0.000000e+00> : vector<128x128xf32>
      %15 = tpu.matmul %13, %14, %cst {dimension_numbers = #tpu.dot_dimension_numbers<[1], [0], [0], [1], [0, 0, 1, 1], [], []>} : vector<128x128xf32>, vector<128x128xf32>, vector<128x128xf32> -> vector<128x128xf32>
      %c0_8 = arith.constant 0 : index
      %c0_9 = arith.constant 0 : index
      %16 = vector.load %arg4[%c0_8, %c0_9] : memref<1x128xf32, #tpu.memory_space<vmem>>, vector<1x128xf32>
      %17 = vector.broadcast %16 : vector<1x128xf32> to vector<128x128xf32>
      %18 = arith.addf %15, %17 : vector<128x128xf32>
      %19 = arith.index_cast %1 : i32 to index
      %c0_10 = arith.constant 0 : index
      %20 = vector.load %arg10[%19, %c0_10] : memref<512x128xf32, #tpu.memory_space<vmem>>, vector<128x128xf32>
      tpu.vector_store %arg10[%19, %c0_10], %18 {strides = array<i32>} : memref<512x128xf32, #tpu.memory_space<vmem>>, vector<128x128xf32>,
      %c0_11 = arith.constant 0 : index
      %c0_12 = arith.constant 0 : index
      %21 = vector.load %arg11[%c0_11, %c0_12] : memref<2x128xf32, #tpu.memory_space<vmem>>, vector<2x128xf32>
      %cst_13 = arith.constant dense<0.000000e+00> : vector<128xf32>
      %22 = vector.multi_reduction <add>, %18, %cst_13 [0] : vector<128x128xf32> to vector<128xf32>
      %23 = vector.shape_cast %22 : vector<128xf32> to vector<1x128xf32>
      %24 = arith.mulf %18, %18 : vector<128x128xf32>
      %cst_14 = arith.constant dense<0.000000e+00> : vector<128xf32>
      %25 = vector.multi_reduction <add>, %24, %cst_14 [0] : vector<128x128xf32> to vector<128xf32>
      %26 = vector.shape_cast %25 : vector<128xf32> to vector<1x128xf32>
      %27 = tpu.concatenate %23, %26 in 0 : vector<1x128xf32>, vector<1x128xf32> -> vector<2x128xf32>
      %28 = arith.addf %21, %27 : vector<2x128xf32>
      %c0_15 = arith.constant 0 : index
      %c0_16 = arith.constant 0 : index
      %29 = vector.load %arg11[%c0_15, %c0_16] : memref<2x128xf32, #tpu.memory_space<vmem>>, vector<2x128xf32>
      tpu.vector_store %arg11[%c0_15, %c0_16], %28 {strides = array<i32>} : memref<2x128xf32, #tpu.memory_space<vmem>>, vector<2x128xf32>,
    } else {
    }
    %c1_i32 = arith.constant 1 : i32
    %10 = arith.cmpi eq, %arg0, %c1_i32 : i32
    %11 = arith.extui %10 : i1 to i32
    %c0_i32_4 = arith.constant 0 : i32
    %12 = arith.cmpi ne, %11, %c0_i32_4 : i32
    scf.if %12 {
      %c0 = arith.constant 0 : index
      %c0_5 = arith.constant 0 : index
      %13 = vector.load %arg11[%c0, %c0_5] : memref<2x128xf32, #tpu.memory_space<vmem>>, vector<1x128xf32>
      %cst = arith.constant 0.001953125 : f32
      %14 = vector.broadcast %cst : f32 to vector<1x128xf32>
      %15 = arith.mulf %13, %14 : vector<1x128xf32>
      %c1 = arith.constant 1 : index
      %c0_6 = arith.constant 0 : index
      %16 = vector.load %arg11[%c1, %c0_6] : memref<2x128xf32, #tpu.memory_space<vmem>>, vector<1x128xf32>
      %cst_7 = arith.constant 0.001953125 : f32
      %17 = vector.broadcast %cst_7 : f32 to vector<1x128xf32>
      %18 = arith.mulf %16, %17 : vector<1x128xf32>
      %19 = arith.mulf %15, %15 : vector<1x128xf32>
      %20 = arith.subf %18, %19 : vector<1x128xf32>
      %cst_8 = arith.constant 9.99999974E-6 : f32
      %21 = vector.broadcast %cst_8 : f32 to vector<1x128xf32>
      %22 = arith.addf %20, %21 : vector<1x128xf32>
      %23 = math.rsqrt %22 : vector<1x128xf32>
      %c0_9 = arith.constant 0 : index
      %c0_10 = arith.constant 0 : index
      %24 = vector.load %arg5[%c0_9, %c0_10] : memref<1x128xf32, #tpu.memory_space<vmem>>, vector<1x128xf32>
      %25 = arith.mulf %24, %23 : vector<1x128xf32>
      %c0_11 = arith.constant 0 : index
      %c0_12 = arith.constant 0 : index
      %26 = vector.load %arg6[%c0_11, %c0_12] : memref<1x128xf32, #tpu.memory_space<vmem>>, vector<1x128xf32>
      %27 = arith.mulf %15, %25 : vector<1x128xf32>
      %28 = arith.subf %26, %27 : vector<1x128xf32>
      %29 = arith.index_cast %1 : i32 to index
      %c0_13 = arith.constant 0 : index
      %30 = vector.load %arg10[%29, %c0_13] : memref<512x128xf32, #tpu.memory_space<vmem>>, vector<128x128xf32>
      %31 = vector.broadcast %25 : vector<1x128xf32> to vector<128x128xf32>
      %32 = arith.mulf %30, %31 : vector<128x128xf32>
      %33 = vector.broadcast %28 : vector<1x128xf32> to vector<128x128xf32>
      %34 = arith.addf %32, %33 : vector<128x128xf32>
      %cst_14 = arith.constant 0.000000e+00 : f32
      %35 = vector.broadcast %cst_14 : f32 to vector<128x128xf32>
      %36 = arith.cmpf ogt, %34, %35 : vector<128x128xf32>
      %37 = math.exp %34 : vector<128x128xf32>
      %cst_15 = arith.constant 1.000000e+00 : f32
      %38 = vector.broadcast %cst_15 : f32 to vector<128x128xf32>
      %39 = arith.subf %37, %38 : vector<128x128xf32>
      %40 = arith.select %36, %34, %39 : vector<128x128xi1>, vector<128x128xf32>
      %c0_16 = arith.constant 0 : index
      %c0_17 = arith.constant 0 : index
      %41 = vector.load %arg7[%c0_16, %c0_17] : memref<128x128xf32, #tpu.memory_space<vmem>>, vector<128x128xf32>
      %cst_18 = arith.constant dense<0.000000e+00> : vector<128x128xf32>
      %42 = tpu.matmul %40, %41, %cst_18 {dimension_numbers = #tpu.dot_dimension_numbers<[1], [0], [0], [1], [0, 0, 1, 1], [], []>} : vector<128x128xf32>, vector<128x128xf32>, vector<128x128xf32> -> vector<128x128xf32>
      %c0_19 = arith.constant 0 : index
      %c0_20 = arith.constant 0 : index
      %43 = vector.load %arg8[%c0_19, %c0_20] : memref<1x128xf32, #tpu.memory_space<vmem>>, vector<1x128xf32>
      %44 = vector.broadcast %43 : vector<1x128xf32> to vector<128x128xf32>
      %45 = arith.addf %42, %44 : vector<128x128xf32>
      %46 = arith.mulf %45, %45 : vector<128x128xf32>
      %cst_21 = arith.constant dense<0.000000e+00> : vector<128xf32>
      %47 = vector.multi_reduction <add>, %46, %cst_21 [1] : vector<128x128xf32> to vector<128xf32>
      %48 = vector.shape_cast %47 : vector<128xf32> to vector<128x1xf32>
      %49 = math.sqrt %48 : vector<128x1xf32>
      %cst_22 = arith.constant 1.000000e-30 : f32
      %50 = vector.broadcast %cst_22 : f32 to vector<128x1xf32>
      %51 = arith.maximumf %49, %50 : vector<128x1xf32>
      %52 = vector.broadcast %51 : vector<128x1xf32> to vector<128x128xf32>
      %53 = arith.divf %45, %52 : vector<128x128xf32>
      %54 = arith.truncf %53 : vector<128x128xf32> to vector<128x128xbf16>
      %c0_23 = arith.constant 0 : index
      %c0_24 = arith.constant 0 : index
      %55 = vector.load %arg9[%c0_23, %c0_24] : memref<128x128xbf16, #tpu.memory_space<vmem>>, vector<128x128xbf16>
      tpu.vector_store %arg9[%c0_23, %c0_24], %54 {strides = array<i32>} : memref<128x128xbf16, #tpu.memory_space<vmem>>, vector<128x128xbf16>,
    } else {
    }
    return
  }
  func.func @transform_0(%arg0: i32, %arg1: i32) -> (i32, i32) {
    %c1_i32 = arith.constant 1 : i32
    %0 = arith.subi %c1_i32, %arg0 : i32
    %1 = arith.muli %arg1, %0 : i32
    %c3_i32 = arith.constant 3 : i32
    %2 = arith.muli %c3_i32, %arg0 : i32
    %3 = arith.addi %1, %2 : i32
    %c0_i32 = arith.constant 0 : i32
    %c0_i32_0 = arith.constant 0 : i32
    return %3, %c0_i32 : i32, i32
  }
  func.func @transform_1(%arg0: i32, %arg1: i32) -> (i32, i32) {
    %c0_i32 = arith.constant 0 : i32
    %c0_i32_0 = arith.constant 0 : i32
    %c0_i32_1 = arith.constant 0 : i32
    return %c0_i32, %c0_i32_0 : i32, i32
  }
  func.func @transform_2(%arg0: i32, %arg1: i32) -> (i32, i32) {
    %c0_i32 = arith.constant 0 : i32
    %c0_i32_0 = arith.constant 0 : i32
    %c0_i32_1 = arith.constant 0 : i32
    return %c0_i32, %c0_i32_0 : i32, i32
  }
  func.func @transform_3(%arg0: i32, %arg1: i32) -> (i32, i32) {
    %c0_i32 = arith.constant 0 : i32
    %c0_i32_0 = arith.constant 0 : i32
    %c0_i32_1 = arith.constant 0 : i32
    return %c0_i32, %c0_i32_0 : i32, i32
  }
  func.func @transform_4(%arg0: i32, %arg1: i32) -> (i32, i32) {
    %c0_i32 = arith.constant 0 : i32
    %c0_i32_0 = arith.constant 0 : i32
    %c0_i32_1 = arith.constant 0 : i32
    return %c0_i32, %c0_i32_0 : i32, i32
  }
  func.func @transform_5(%arg0: i32, %arg1: i32) -> (i32, i32) {
    %c0_i32 = arith.constant 0 : i32
    %c0_i32_0 = arith.constant 0 : i32
    %c0_i32_1 = arith.constant 0 : i32
    return %c0_i32, %c0_i32_0 : i32, i32
  }
  func.func @transform_6(%arg0: i32, %arg1: i32) -> (i32, i32) {
    %c0_i32 = arith.constant 0 : i32
    %c0_i32_0 = arith.constant 0 : i32
    %c0_i32_1 = arith.constant 0 : i32
    return %c0_i32, %c0_i32_0 : i32, i32
  }
  func.func @transform_7(%arg0: i32, %arg1: i32) -> (i32, i32) {
    %0 = arith.muli %arg1, %arg0 : i32
    %c0_i32 = arith.constant 0 : i32
    %c0_i32_0 = arith.constant 0 : i32
    return %0, %c0_i32 : i32, i32
  }
}

</mosaic_0001>

<bundles_post_ra>
// kernel: tpu_custom_call.1
= control target key start
LH: loop header
LB: loop body
LE: loop exit
PB: predicated region body
PF: predicated region fallthrough
CT: control target
= control target key end

     0   :  { %s3119_s0 = inlined_call_operand.hbm [shape: f32[512,128], index: 0, kind: input, shape index: {}]   ;;  %s3120_s1 = inlined_call_operand.hbm [shape: f32[128,128], index: 1, kind: input, shape index: {}]   ;;  %s3121_s2 = inlined_call_operand.vmem [shape: f32[1,128], index: 2, kind: input, shape index: {}]   ;;  %s3122_s3 = inlined_call_operand.vmem [shape: f32[1,128], index: 3, kind: input, shape index: {}]   ;;  %s3123_s4 = inlined_call_operand.vmem [shape: f32[1,128], index: 4, kind: input, shape index: {}]   ;;  %s3124_s5 = inlined_call_operand.hbm [shape: f32[128,128], index: 5, kind: input, shape index: {}]   ;;  %s3125_s6 = inlined_call_operand.vmem [shape: f32[1,128], index: 6, kind: input, shape index: {}]   ;;  %s3126_s7 = inlined_call_operand.hbm [shape: bf16[512,128], index: 7, kind: output, shape index: {}]  }
   0x1   :  { %3138 = sst [smem:[#allocation22_spill]] %s3120_s1 }
   0x2   :  { %3139 = sst [smem:[#allocation23_spill]] %s3121_s2 }
   0x3   :  { %3140 = sst [smem:[#allocation24_spill]] %s3122_s3 }
   0x4   :  { %3141 = sst [smem:[#allocation25_spill]] %s3123_s4 }
   0x5   :  { %3142 = sst [smem:[#allocation26_spill]] %s3124_s5 }
   0x6   :  { %3143 = sst [smem:[#allocation27_spill]] %s3125_s6 }
   0x7   :  { %3144 = sst [smem:[#allocation28_spill]] %s3126_s7 }
   0x8   :  { %12 = vsyncpa [#allocation5], 0 }
   0x9   :  { %14 = vsyncpa [#allocation5 + $0x1], 0 }
   0xa   :  { %15 = vsyncpa [#allocation8], 0 }
   0xb   :  { %16 = vsyncpa [#allocation6], 0 }
   0xc   :  { %18 = vsyncpa [#allocation6 + $0x1], 0  ;;  %s2133_s24 = smov 0   ;;  %s2135_s25 = smov 0  }
   0xd   :  { %s2137_s26 = smov 0   ;;  %s2139_s27 = smov 0  }
   0xe   :  { %s2141_s28 = smov 0   ;;  %s2143_s29 = smov 0  }
   0xf   :  { %s2145_s30 = smov 0   ;;  %s2147_s8 = smov 0  }
  0x10   :  { %s2149_s9 = smov 0   ;;  %s2151_s10 = smov 0  }
  0x11   :  { %s2153_s11 = smov 0  }
  0x12 LB: > { %3145 = sst [smem:[#allocation14_spill]] %s2044_s24  ;;  %s1457_s12 = sadd.s32 4294967295, %s2084_s11   ;;  %s2084_s11 = sphi %s2153_s11, %s24_s11   ;;  %s2080_s10 = sphi %s2151_s10, %s3208_s10   ;;  %s2076_s9 = sphi %s2149_s9, %s3207_s9   ;;  %s2072_s8 = sphi %s2147_s8, %s3206_s8   ;;  %s2068_s30 = sphi %s2145_s30, %s3205_s30   ;;  %s2064_s29 = sphi %s2143_s29, %s3214_s29   ;;  %s2060_s28 = sphi %s2141_s28, %s3213_s28   ;;  %s2056_s27 = sphi %s2139_s27, %s3212_s27   ;;  %s2052_s26 = sphi %s2137_s26, %s3211_s26   ;;  %s2048_s25 = sphi %s2135_s25, %s3210_s25   ;;  %s2044_s24 = sphi %s2133_s24, %s3209_s24  }
  0x13   : > { %3146 = sst [smem:[#allocation15_spill]] %s2072_s8  ;;  %s1458_s13 = sadd.s32 4294967294, %s2084_s11  }
  0x14   : > { %3147 = sst [smem:[#allocation16_spill]] %s2076_s9  ;;  %p64_p0 = scmp.ne.s32.totalorder %s2060_s28, %s2056_s27 }
  0x15   : > { %3148 = sst [smem:[#allocation17_spill]] %s2080_s10  ;;  %p2189_p1 = scmp.eq.s32.totalorder %s1457_s12, 0 }
  0x16   : > { %p215_p2 = scmp.ne.s32.totalorder %s2052_s26, %s2048_s25  ;;  %p216_p3 = scmp.eq.s32.totalorder %s1457_s12, 7 }
  0x17   : > { %p2197_p4 = por %p2189_p1, %p64_p0  ;;  %p221_p5 = scmp.ne.s32.totalorder %s2048_s25, %s2044_s24 }
  0x18   : > { %p2203_p6 = por %p216_p3, %p215_p2  ;;  %p222_p7 = scmp.eq.s32.totalorder %s1458_s13, 7 }
  0x19   : > { %p1459_p8 = scmp.ge.s32.totalorder %s2084_s11, 1  ;;  %p229_p9 = scmp.lt.s32.totalorder %s2084_s11, 9 }
  0x1a   : > { %s3151_s16 = scalar_select %p2203_p6, 1, 0 }
  0x1b   : > { %p2209_p10 = por %p222_p7, %p221_p5  ;;  %p2213_p11 = pnand %p1459_p8, %p229_p9 }
  0x1c   : > { %3152 = sst [smem:[#allocation18_spill]] %s3151_s16  ;;  %s2086_s22 = smov [#allocation7]  }
  0x1d   : > { %s3153_s17 = scalar_select %p2209_p10, 1, 0 }
  0x1e   : > { %s3156_s1 = sld [smem:[#allocation22_spill]]  ;;  %p1652_p12 = pneg %p2213_p11 }
  0x1f   : > { %3154 = sst [smem:[#allocation19_spill]] %s3153_s17  ;;  %s242_s23 = sshll.u32 %s2086_s22, 4  ;;  %s243_s23 = int_to_ptr.vmem [resolvable:$true] %s242_s23 }
  0x20   : > { %p1653_p13 = pnand %p1652_p12, %p2189_p1  ;;  %s3157_s5 = sld [smem:[#allocation26_spill]] }
  0x21   : > { %s3128_s19 = smov 128   ;;  %s3129_s20 = smov 8  }
  0x22   : > { %s2089_s22 = smov [#allocation9]   ;;  %s33_s27 = sadd.s32 1, %s2076_s9 }
  0x23   : > { %p34_p0 = scmp.ge.s32.totalorder %s33_s27, 4  ;;  %s36_s12 = sadd.s32 1, %s2080_s10 }
  0x24   : > { %s240_s21 = sshll.u32 %s3156_s1, 4  ;;  %s265_s1 = sshll.u32 %s2089_s22, 4  ;;  %s241_s21 = int_to_ptr.hbm [resolvable:$true] %s240_s21  ;;  %s266_s1 = int_to_ptr.vmem [resolvable:$true] %s265_s1 }
  0x25   : > { %1655 = dma.hbm_to_vmem [thread:$0]  (!%p1653_p13), %s241_s21, 2048, %s243_s23, [#allocation8], %s3128_s19, %s3128_s19, %s3129_s20  }
  0x26   : > { %s263_s13 = sshll.u32 %s3157_s5, 4  ;;  %s40_s5 = ssub.s32 1, %s2080_s10  ;;  %s264_s13 = int_to_ptr.hbm [resolvable:$true] %s263_s13 }
  0x27   : > { %1658 = dma.hbm_to_vmem [thread:$0]  (!%p1653_p13), %s264_s13, 2048, %s266_s1, [#allocation8], %s3128_s19, %s3128_s19, %s3129_s20  }
  0x28   : > { %s42_s17 = smul.u32 3, %s2080_s10  ;;  %s3216_s27 = smov (%p34_p0, %s33_s27), 0 }
  0x29   : > { %3158 = sst [smem:[#allocation20_spill]] %s3216_s27  ;;  %s3218_s12 = smov (!%p34_p0, %s36_s12), %s2080_s10 }
  0x2a   : > { %s41_s21 = smul.u32 %s2076_s9, %s40_s5  ;;  %s51_s23 = sadd.s32 1, %s2064_s29 }
  0x2b   : > { %p38_p2 = scmp.ge.s32.totalorder %s3218_s12, 2  ;;  %p58_p3 = scmp.ne.s32.totalorder %s2064_s29, %s2060_s28 }
  0x2c   : > { %s43_s1 = sadd.s32 %s42_s17, %s41_s21  ;;  %p59_p5 = scmp.eq.s32.totalorder %s2084_s11, 0 }
  0x2d   : > { %s3220_s12 = smov (%p38_p2, %s3218_s12), 0  ;;  %s200_s22 = smul.u32 %s2076_s9, %s2080_s10 }
  0x2e   : > { %3159 = sst [smem:[#allocation21_spill]] %s3220_s12  ;;  %p2247_p7 = por %p59_p5, %p58_p3 }
  0x2f   : > { %s44_s19 = ssub.s32 1, %s3220_s12  ;;  %s46_s5 = smul.u32 3, %s3220_s12 }
  0x30   : > { %s45_s20 = smul.u32 %s44_s19, %s3216_s27  ;;  %s205_s24 = sadd.s32 1, %s2052_s26 }
  0x31   : > { %s201_s7 = smul.u32 %s3220_s12, %s3216_s27  ;;  %p1669_p8 = scmp.lt.s32.totalorder %s2084_s11, 8 }
  0x32   : > { %s47_s17 = sadd.s32 %s46_s5, %s45_s20  ;;  %s282_s21 = sand.u32 1, %s2064_s29  }
  0x33   : > { %s48_s16 = ssub.s32 %s43_s1, %s47_s17  ;;  %s202_s6 = ssub.s32 %s200_s22, %s201_s7 }
  0x34   : > { %p49_p9 = scmp.eq.s32.totalorder %s48_s16, 0  ;;  %p203_p12 = scmp.eq.s32.totalorder %s202_s6, 0 }
  0x35   : > { %s1463_s4 = sshll.u32 %s282_s21, 7  ;;  %s1495_s10 = sshll.u32 %s43_s1, 7 }
  0x36   : > { %s2262_s3 = scalar_select %p49_p9, %s2064_s29, %s51_s23  }
  0x37   : > { %s2265_s2 = scalar_select %p203_p12, %s2052_s26, %s205_s24  }
  0x38   : > { %s295_s19 = scalar_lea.hbm %s3119_s0, %s1495_s10  ;;  %s286_s12 = scalar_lea.vmem [#allocation4], %s1463_s4 }
  0x39   : > { %s298_s27 = sshll.u32 %s286_s12, 4  ;;  %s296_s20 = sshll.u32 %s295_s19, 4  ;;  %s299_s27 = int_to_ptr.vmem [resolvable:$true] %s298_s27  ;;  %s297_s20 = int_to_ptr.hbm [resolvable:$true] %s296_s20 }
  0x3a   : > { %p1660_p13 = pnand %p1669_p8, %p2247_p7  ;;  %s283_s7 = scalar_lea.sflag [#allocation5], %s282_s21 }
  0x3b   : > { %s1928_s6 = sshra.s32 %s297_s20, 4  ;;  %s1935_s8 = scalar_lea.hbm %s3119_s0, 512  ;;  %s1929_s6 = int_to_ptr.hbm [resolvable:$true] %s1928_s6 }
  0x3c   : > { %s1930_s16 = scalar_lea.hbm %s1929_s6, 128  ;;  %p1932_p2 = pneg %p1660_p13 }
  0x3d   : > { %p1931_p0 = scmp.ne.s32.totalorder %s1929_s6, %s1930_s16  ;;  %p1937_p9 = scmp.lt.s32.totalorder %s1935_s8, %s1930_s16 }
  0x3f   : > { %p1933_p3 = pnand %p1932_p2, %p1931_p0 }
  0x41   : > { %p1934_p5 = pneg %p1933_p3 }
  0x43   : > { %p1939_p12 = pnand %p1937_p9, %p1934_p5 }
  0x45   : > { %1942 = shalt.err (!%p1939_p12)
}
  0x46   : > { %s3161_s4 = smov 8   ;;  %s3162_s9 = smov 128  }
  0x47   : > { %1662 = dma.hbm_to_vmem [thread:$0]  (!%p1660_p13), %s297_s20, 2048, %s299_s27, %s283_s7, %s3162_s9, %s3162_s9, %s3161_s4  }
  0x48   : > { %310 = sbr.rel (%p2213_p11) target bundleno = 800 (0x320), region = 48  ;;  %s312_s10 = sand.u32 (!%p2213_p11), 1, %s2060_s28  }
  0x49   : > { %s1467_s12 = sshll.u32 (!%p2213_p11), %s312_s10, 7  ;;  %s313_s1 = scalar_lea.sflag (!%p2213_p11), [#allocation5], %s312_s10 }
  0x4a   : > { %s2283_s13 = scalar_lea.vmem (!%p2213_p11), [#allocation4], %s1467_s12 }
  0x4d   : > { %2031 = dma.done.wait (%p2197_p4), %s313_s1, 2048  }
  0x4e   : > { %2033 = vsyncadd (%p2197_p4), %s313_s1, 4294965248 }
  0x4f   : > { %2035 = dma.done.wait (%p2189_p1), [#allocation8], 4096  }
  0x50   : > { %2037 = vsyncadd (%p2189_p1), [#allocation8], 4294963200  ;;  %s3163_s18 = sld [smem:[#allocation15_spill]]  ;;  %s355_s27 = sand.u32 1, %s2048_s25  }
  0x51   : > { %s1471_s22 = sshll.u32 %s2068_s30, 7  ;;  %s1470_s5 = sshll.u32 %s355_s27, 6 }
  0x52   : > { %p367_p7 = scmp.eq.s32.totalorder %s2068_s30, 0  ;;  %s2299_s15 = scalar_lea.vmem [#allocation10], %s1470_s5 }
  0x56   : > { %p366_p11 = scmp.eq.s32.totalorder %s3163_s18, 0 }
  0x58   : > { %p368_p8 = pnand %p367_p7, %p366_p11 }
  0x5a   : > { %371 = sbr.rel (%p368_p8) target bundleno = 97 (0x61), region = 64 }
  0x5f   : > { %v2090_v0 = vmov 0.0  }
  0x60   : > { %372 = vst [vmem:[#allocation3] sm:$0x3] %v2090_v0 }
  0x61 PF: > { %s3164_s14 = sld [smem:[#allocation15_spill]] }
  0x67   : > { %p1472_p1 = scmp.ne.s32.totalorder %s3164_s14, 0 }
  0x68   : > { %s3165_s19 = sld [smem:[#allocation23_spill]] (!%p1472_p1)  ;;  %s2327_s20 = scalar_lea.vmem (!%p1472_p1), [#allocation2], %s1471_s22 }
  0x69   : > { %375 = sbr.rel (%p1472_p1) target bundleno = 338 (0x152), region = 68 }
  0x6e   : > { %v407_v1 = vld [vmem:[#allocation7 + $0x78] sm:$0xff]  ;;  %v406_v2 = vld [vmem:[#allocation7 + $0x70] sm:$0xff]  ;;  %v405_v3 = vld [vmem:[#allocation7 + $0x68] sm:$0xff]  ;;  %vm553_vm0 = vcmask 1040384  }
  0x6f   : > { %412 = vmatpush.msra.mxu0 %v407_v1  ;;  %1544 = vmatpush.msra.mxu1 %v407_v1  ;;  %v404_v4 = vld [vmem:[#allocation7 + $0x60] sm:$0xff]  ;;  %v403_v5 = vld [vmem:[#allocation7 + $0x58] sm:$0xff]  ;;  %v402_v6 = vld [vmem:[#allocation7 + $0x50] sm:$0xff] }
  0x70   : > { %1545 = vmatpush.msra.mxu2 %v407_v1  ;;  %1546 = vmatpush.msra.mxu3 %v407_v1  ;;  %v401_v7 = vld [vmem:[#allocation7 + $0x48] sm:$0xff]  ;;  %v400_v8 = vld [vmem:[#allocation7 + $0x40] sm:$0xff]  ;;  %v399_v9 = vld [vmem:[#allocation7 + $0x38] sm:$0xff] }
  0x71   : > { %413 = vmatpush.msra.mxu0 %v406_v2  ;;  %1547 = vmatpush.msra.mxu1 %v406_v2  ;;  %v398_v10 = vld [vmem:[#allocation7 + $0x30] sm:$0xff]  ;;  %v397_v11 = vld [vmem:[#allocation7 + $0x28] sm:$0xff]  ;;  %v396_v12 = vld [vmem:[#allocation7 + $0x20] sm:$0xff] }
  0x72   : > { %1548 = vmatpush.msra.mxu2 %v406_v2  ;;  %1549 = vmatpush.msra.mxu3 %v406_v2  ;;  %v395_v13 = vld [vmem:[#allocation7 + $0x18] sm:$0xff]  ;;  %v394_v14 = vld [vmem:[#allocation7 + $0x10] sm:$0xff]  ;;  %v393_v15 = vld [vmem:[#allocation7 + $0x8] sm:$0xff] }
  0x73   : > { %414 = vmatpush.msra.mxu0 %v405_v3  ;;  %1550 = vmatpush.msra.mxu1 %v405_v3  ;;  %v392_v16 = vld [vmem:[#allocation7] sm:$0xff]  ;;  %v377_v21 = vld [vmem:[%s2283_s13 + $0x8] sm:$0xff]  ;;  %v378_v25 = vld [vmem:[%s2283_s13 + $0x10] sm:$0xff] }
  0x74   : > { %1551 = vmatpush.msra.mxu2 %v405_v3  ;;  %1552 = vmatpush.msra.mxu3 %v405_v3  ;;  %v376_v17 = vld [vmem:[%s2283_s13] sm:$0xff]  ;;  %v381_v22 = vld [vmem:[%s2283_s13 + $0x28] sm:$0xff]  ;;  %v382_v26 = vld [vmem:[%s2283_s13 + $0x30] sm:$0xff] }
  0x75   : > { %415 = vmatpush.msra.mxu0 %v404_v4  ;;  %1553 = vmatpush.msra.mxu1 %v404_v4  ;;  %v380_v18 = vld [vmem:[%s2283_s13 + $0x20] sm:$0xff]  ;;  %v385_v23 = vld [vmem:[%s2283_s13 + $0x48] sm:$0xff]  ;;  %v386_v27 = vld [vmem:[%s2283_s13 + $0x50] sm:$0xff] }
  0x76   : > { %1554 = vmatpush.msra.mxu2 %v404_v4  ;;  %1555 = vmatpush.msra.mxu3 %v404_v4  ;;  %v384_v19 = vld [vmem:[%s2283_s13 + $0x40] sm:$0xff]  ;;  %v389_v24 = vld [vmem:[%s2283_s13 + $0x68] sm:$0xff]  ;;  %v390_v28 = vld [vmem:[%s2283_s13 + $0x70] sm:$0xff] }
  0x77   : > { %416 = vmatpush.msra.mxu0 %v403_v5  ;;  %1556 = vmatpush.msra.mxu1 %v403_v5  ;;  %v388_v20 = vld [vmem:[%s2283_s13 + $0x60] sm:$0xff]  ;;  %v379_v29 = vld [vmem:[%s2283_s13 + $0x18] sm:$0xff] }
  0x78   : > { %1557 = vmatpush.msra.mxu2 %v403_v5  ;;  %1558 = vmatpush.msra.mxu3 %v403_v5  ;;  %v383_v30 = vld [vmem:[%s2283_s13 + $0x38] sm:$0xff] }
  0x79   : > { %417 = vmatpush.msra.mxu0 %v402_v6  ;;  %1559 = vmatpush.msra.mxu1 %v402_v6  ;;  %v387_v31 = vld [vmem:[%s2283_s13 + $0x58] sm:$0xff] }
  0x7a   : > { %1560 = vmatpush.msra.mxu2 %v402_v6  ;;  %1561 = vmatpush.msra.mxu3 %v402_v6  ;;  %v391_v32 = vld [vmem:[%s2283_s13 + $0x78] sm:$0xff] }
  0x7b   : > { %418 = vmatpush.msra.mxu0 %v401_v7  ;;  %1562 = vmatpush.msra.mxu1 %v401_v7  ;;  %v2321_v33 = vld [vmem:[%s3165_s19] ss:$0 sm:$0xff] }
  0x7c   : > { %1563 = vmatpush.msra.mxu2 %v401_v7  ;;  %1564 = vmatpush.msra.mxu3 %v401_v7 }
  0x7d   : > { %419 = vmatpush.msra.mxu0 %v400_v8  ;;  %1565 = vmatpush.msra.mxu1 %v400_v8 }
  0x7e   : > { %1566 = vmatpush.msra.mxu2 %v400_v8  ;;  %1567 = vmatpush.msra.mxu3 %v400_v8 }
  0x7f   : > { %420 = vmatpush.msra.mxu0 %v399_v9  ;;  %1568 = vmatpush.msra.mxu1 %v399_v9 }
  0x80   : > { %1569 = vmatpush.msra.mxu2 %v399_v9  ;;  %1570 = vmatpush.msra.mxu3 %v399_v9 }
  0x81   : > { %421 = vmatpush.msra.mxu0 %v398_v10  ;;  %1571 = vmatpush.msra.mxu1 %v398_v10 }
  0x82   : > { %1572 = vmatpush.msra.mxu2 %v398_v10  ;;  %1573 = vmatpush.msra.mxu3 %v398_v10 }
  0x83   : > { %422 = vmatpush.msra.mxu0 %v397_v11  ;;  %1574 = vmatpush.msra.mxu1 %v397_v11 }
  0x84   : > { %1575 = vmatpush.msra.mxu2 %v397_v11  ;;  %1576 = vmatpush.msra.mxu3 %v397_v11 }
  0x85   : > { %423 = vmatpush.msra.mxu0 %v396_v12  ;;  %1577 = vmatpush.msra.mxu1 %v396_v12 }
  0x86   : > { %1578 = vmatpush.msra.mxu2 %v396_v12  ;;  %1579 = vmatpush.msra.mxu3 %v396_v12 }
  0x87   : > { %424 = vmatpush.msra.mxu0 %v395_v13  ;;  %1580 = vmatpush.msra.mxu1 %v395_v13 }
  0x88   : > { %1581 = vmatpush.msra.mxu2 %v395_v13  ;;  %1582 = vmatpush.msra.mxu3 %v395_v13 }
  0x89   : > { %425 = vmatpush.msra.mxu0 %v394_v14  ;;  %1583 = vmatpush.msra.mxu1 %v394_v14 }
  0x8a   : > { %1584 = vmatpush.msra.mxu2 %v394_v14  ;;  %1585 = vmatpush.msra.mxu3 %v394_v14 }
  0x8b   : > { %426 = vmatpush.msra.mxu0 %v393_v15  ;;  %1586 = vmatpush.msra.mxu1 %v393_v15 }
  0x8c   : > { %1587 = vmatpush.msra.mxu2 %v393_v15  ;;  %1588 = vmatpush.msra.mxu3 %v393_v15 }
  0x8d   : > { %427 = vmatpush.msra.mxu0 %v392_v16  ;;  %1589 = vmatpush.msra.mxu1 %v392_v16 }
  0x8e   : > { %428 = vmatmul.f32.vlgmr.msra.gmra.mxu0 %v376_v17  ;;  %440 = vmatmul.f32.vlgmr.msra.gmra.mxu1 %v380_v18 }
  0x8f   : > { %1590 = vmatpush.msra.mxu2 %v392_v16  ;;  %1591 = vmatpush.msra.mxu3 %v392_v16 }
  0x90   : > { %452 = vmatmul.f32.vlgmr.msra.gmra.mxu2 %v384_v19  ;;  %464 = vmatmul.f32.vlgmr.msra.gmra.mxu3 %v388_v20 }
  0x96   : > { %431 = vmatmul.f32.gmra.mxu0 %v377_v21  ;;  %443 = vmatmul.f32.gmra.mxu1 %v381_v22 }
  0x98   : > { %455 = vmatmul.f32.gmra.mxu2 %v385_v23  ;;  %467 = vmatmul.f32.gmra.mxu3 %v389_v24 }
  0x9e   : > { %434 = vmatmul.f32.gmra.mxu0 %v378_v25  ;;  %446 = vmatmul.f32.gmra.mxu1 %v382_v26 }
  0xa0   : > { %458 = vmatmul.f32.gmra.mxu2 %v386_v27  ;;  %470 = vmatmul.f32.gmra.mxu3 %v390_v28 }
  0xa6   : > { %437 = vmatmul.f32.gmra.mxu0 %v379_v29  ;;  %449 = vmatmul.f32.gmra.mxu1 %v383_v30 }
  0xa8   : > { %461 = vmatmul.f32.gmra.mxu2 %v387_v31  ;;  %473 = vmatmul.f32.gmra.mxu3 %v391_v32 }
 0x10b   : > { %v429_v34 = vpop.f32.mrf.mxu0  ;;  %v441_v35 = vpop.f32.mrf.mxu1 }
 0x10c   : > { %v430_v36 = vadd.f32 %v2321_v33, %v429_v34  ;;  %v442_v37 = vadd.f32 %v2321_v33, %v441_v35 }
 0x10e   : > { %478 = vst [vmem:[%s2327_s20] sm:$0xff] %v430_v36  ;;  %v516_v55 = vmul.f32 %v430_v36, %v430_v36  ;;  %v520_v7 = vmul.f32 %v442_v37, %v442_v37 }
 0x10f   : > { %482 = vst [vmem:[%s2327_s20 + $0x20] sm:$0xff] %v442_v37 }
 0x113   : > { %v432_v38 = vpop.f32.mrf.mxu0  ;;  %v444_v39 = vpop.f32.mrf.mxu1 }
 0x114   : > { %v433_v40 = vadd.f32 %v2321_v33, %v432_v38  ;;  %v445_v41 = vadd.f32 %v2321_v33, %v444_v39  ;;  %v453_v42 = vpop.f32.mrf.mxu2  ;;  %v465_v43 = vpop.f32.mrf.mxu3 }
 0x115   : > { %v454_v44 = vadd.f32 %v2321_v33, %v453_v42  ;;  %v2335_v45 = vadd.f32 %v2321_v33, %v465_v43 }
 0x116   : > { %479 = vst [vmem:[%s2327_s20 + $0x8] sm:$0xff] %v433_v40  ;;  %v517_v54 = vmul.f32 %v433_v40, %v433_v40  ;;  %v495_v56 = vadd.f32 %v433_v40, %v430_v36  ;;  %v521_v10 = vmul.f32 %v445_v41, %v445_v41 }
 0x117   : > { %483 = vst [vmem:[%s2327_s20 + $0x28] sm:$0xff] %v445_v41  ;;  %v524_v23 = vmul.f32 %v454_v44, %v454_v44  ;;  %v528_v36 = vmul.f32 %v2335_v45, %v2335_v45 }
 0x118   : > { %486 = vst [vmem:[%s2327_s20 + $0x40] sm:$0xff] %v454_v44  ;;  %v532_v60 = vadd.f32 %v517_v54, %v516_v55 }
 0x119   : > { %490 = vst [vmem:[%s2327_s20 + $0x60] sm:$0xff] %v2335_v45 }
 0x11b   : > { %v435_v46 = vpop.f32.mrf.mxu0  ;;  %v447_v47 = vpop.f32.mrf.mxu1 }
 0x11c   : > { %v436_v48 = vadd.f32 %v2321_v33, %v435_v46  ;;  %v448_v49 = vadd.f32 %v2321_v33, %v447_v47  ;;  %v456_v50 = vpop.f32.mrf.mxu2  ;;  %v468_v51 = vpop.f32.mrf.mxu3 }
 0x11d   : > { %v457_v52 = vadd.f32 %v2321_v33, %v456_v50  ;;  %v469_v53 = vadd.f32 %v2321_v33, %v468_v51 }
 0x11e   : > { %480 = vst [vmem:[%s2327_s20 + $0x10] sm:$0xff] %v436_v48  ;;  %v518_v57 = vmul.f32 %v436_v48, %v436_v48  ;;  %v496_v61 = vadd.f32 %v495_v56, %v436_v48  ;;  %v522_v14 = vmul.f32 %v448_v49, %v448_v49 }
 0x11f   : > { %484 = vst [vmem:[%s2327_s20 + $0x30] sm:$0xff] %v448_v49  ;;  %v525_v26 = vmul.f32 %v457_v52, %v457_v52  ;;  %v529_v38 = vmul.f32 %v469_v53, %v469_v53 }
 0x120   : > { %487 = vst [vmem:[%s2327_s20 + $0x48] sm:$0xff] %v457_v52  ;;  %v533_v4 = vadd.f32 %v532_v60, %v518_v57 }
 0x121   : > { %491 = vst [vmem:[%s2327_s20 + $0x68] sm:$0xff] %v469_v53 }
 0x123   : > { %v438_v58 = vpop.f32.mrf.mxu0  ;;  %v450_v59 = vpop.f32.mrf.mxu1 }
 0x124   : > { %v439_v62 = vadd.f32 %v2321_v33, %v438_v58  ;;  %v451_v63 = vadd.f32 %v2321_v33, %v450_v59  ;;  %v459_v0 = vpop.f32.mrf.mxu2  ;;  %v471_v1 = vpop.f32.mrf.mxu3  ;;  %v494_v59 = vld [vmem:[#allocation3] sm:$0x3] }
 0x125   : > { %v460_v2 = vadd.f32 %v2321_v33, %v459_v0  ;;  %v472_v3 = vadd.f32 %v2321_v33, %v471_v1 }
 0x126   : > { %481 = vst [vmem:[%s2327_s20 + $0x18] sm:$0xff] %v439_v62  ;;  %v497_v5 = vadd.f32 %v496_v61, %v439_v62  ;;  %v519_v6 = vmul.f32 %v439_v62, %v439_v62  ;;  %v523_v16 = vmul.f32 %v451_v63, %v451_v63 }
 0x127   : > { %485 = vst [vmem:[%s2327_s20 + $0x38] sm:$0xff] %v451_v63  ;;  %v526_v30 = vmul.f32 %v460_v2, %v460_v2  ;;  %v530_v42 = vmul.f32 %v472_v3, %v472_v3 }
 0x128   : > { %v498_v8 = vadd.f32 %v497_v5, %v442_v37  ;;  %v534_v9 = vadd.f32 %v533_v4, %v519_v6  ;;  %488 = vst [vmem:[%s2327_s20 + $0x50] sm:$0xff] %v460_v2 }
 0x129   : > { %492 = vst [vmem:[%s2327_s20 + $0x70] sm:$0xff] %v472_v3 }
 0x12a   : > { %v535_v11 = vadd.f32 %v534_v9, %v520_v7  ;;  %v499_v12 = vadd.f32 %v498_v8, %v445_v41 }
 0x12c   : > { %v500_v13 = vadd.f32 %v499_v12, %v448_v49  ;;  %v536_v15 = vadd.f32 %v535_v11, %v521_v10  ;;  %v462_v17 = vpop.f32.mrf.mxu2  ;;  %v474_v18 = vpop.f32.mrf.mxu3 }
 0x12d   : > { %v463_v19 = vadd.f32 %v2321_v33, %v462_v17  ;;  %v475_v20 = vadd.f32 %v2321_v33, %v474_v18 }
 0x12e   : > { %v537_v21 = vadd.f32 %v536_v15, %v522_v14  ;;  %v501_v22 = vadd.f32 %v500_v13, %v451_v63 }
 0x12f   : > { %489 = vst [vmem:[%s2327_s20 + $0x58] sm:$0xff] %v463_v19  ;;  %v527_v32 = vmul.f32 %v463_v19, %v463_v19 }
 0x130   : > { %v502_v24 = vadd.f32 %v501_v22, %v454_v44  ;;  %v538_v25 = vadd.f32 %v537_v21, %v523_v16  ;;  %493 = vst [vmem:[%s2327_s20 + $0x78] sm:$0xff] %v475_v20  ;;  %v531_v44 = vmul.f32 %v475_v20, %v475_v20 }
 0x132   : > { %v539_v27 = vadd.f32 %v538_v25, %v524_v23  ;;  %v503_v28 = vadd.f32 %v502_v24, %v457_v52 }
 0x134   : > { %v504_v29 = vadd.f32 %v503_v28, %v460_v2  ;;  %v540_v31 = vadd.f32 %v539_v27, %v525_v26 }
 0x136   : > { %v541_v34 = vadd.f32 %v540_v31, %v526_v30  ;;  %v505_v35 = vadd.f32 %v504_v29, %v463_v19 }
 0x138   : > { %v506_v33 = vadd.f32 %v505_v35, %v2335_v45  ;;  %v542_v37 = vadd.f32 %v541_v34, %v527_v32 }
 0x13a   : > { %v543_v39 = vadd.f32 %v542_v37, %v528_v36  ;;  %v507_v40 = vadd.f32 %v506_v33, %v469_v53 }
 0x13c   : > { %v508_v41 = vadd.f32 %v507_v40, %v472_v3  ;;  %v544_v43 = vadd.f32 %v543_v39, %v529_v38 }
 0x13e   : > { %v545_v46 = vadd.f32 %v544_v43, %v530_v42  ;;  %v509_v47 = vadd.f32 %v508_v41, %v475_v20 }
 0x140   : > { %v510_v48 = vrot.slane %v509_v47, 4  ;;  %v546_v49 = vadd.f32 %v545_v46, %v531_v44 }
 0x142   : > { %v511_v50 = vadd.f32 %v510_v48, %v509_v47  ;;  %v547_v51 = vrot.slane %v546_v49, 4 }
 0x144   : > { %v512_v52 = vrot.slane %v511_v50, 2  ;;  %v548_v54 = vadd.f32 %v547_v51, %v546_v49 }
 0x146   : > { %v513_v55 = vadd.f32 %v512_v52, %v511_v50  ;;  %v549_v56 = vrot.slane %v548_v54, 2 }
 0x148   : > { %v514_v57 = vrot.slane %v513_v55, 1  ;;  %v550_v45 = vadd.f32 %v549_v56, %v548_v54 }
 0x14a   : > { %v551_v58 = vrot.slane %v550_v45, 1  ;;  %v515_v53 = vadd.f32 %v514_v57, %v513_v55 }
 0x14c   : > { %v552_v60 = vadd.f32 %v551_v58, %v550_v45 }
 0x14e   : > { %v554_v61 = vsel %vm553_vm0, %v515_v53, %v552_v60 }
 0x14f   : > { %v555_v62 = vadd.f32 %v554_v61, %v494_v59 }
 0x151   : > { %556 = vst [vmem:[#allocation3] sm:$0x3] %v555_v62 }
 0x152 PF: > { %s3166_s7 = sld [smem:[#allocation15_spill]] }
 0x158   : > { %p1473_p4 = scmp.ne.s32.totalorder %s3166_s7, 1 }
 0x159   : > { %s3167_s24 = sld [smem:[#allocation24_spill]] (!%p1473_p4)  ;;  %s2378_s9 = scalar_lea.vmem (!%p1473_p4), [#allocation2], %s1471_s22 }
 0x15a   : > { %560 = sbr.rel (%p1473_p4) target bundleno = 776 (0x308), region = 72  ;;  %s3168_s4 = sld [smem:[#allocation25_spill]] (!%p1473_p4) }
 0x15b   : > { %s3169_s1 = sld [smem:[#allocation27_spill]] (!%p1473_p4) }
 0x15f   : > { %v733_v63 = vld [vmem:[#allocation9 + $0x78] sm:$0xff]  ;;  %v732_v0 = vld [vmem:[#allocation9 + $0x70] sm:$0xff]  ;;  %v731_v1 = vld [vmem:[#allocation9 + $0x68] sm:$0xff] }
 0x160   : > { %738 = vmatpush.msra.mxu0 %v733_v63  ;;  %1592 = vmatpush.msra.mxu1 %v733_v63  ;;  %v730_v2 = vld [vmem:[#allocation9 + $0x60] sm:$0xff]  ;;  %v561_v3 = vld [vmem:[#allocation3] sm:$0x1]  ;;  %v563_v4 = vld [vmem:[#allocation3 + $0x1] sm:$0x1] }
 0x161   : > { %1593 = vmatpush.msra.mxu2 %v733_v63  ;;  %1594 = vmatpush.msra.mxu3 %v733_v63  ;;  %v729_v5 = vld [vmem:[#allocation9 + $0x58] sm:$0xff]  ;;  %v2366_v6 = vmul.f32 0.001953125, %v561_v3  ;;  %v564_v7 = vmul.f32 0.001953125, %v563_v4  ;;  %v728_v8 = vld [vmem:[#allocation9 + $0x50] sm:$0xff]  ;;  %v727_v10 = vld [vmem:[#allocation9 + $0x48] sm:$0xff] }
 0x162   : > { %739 = vmatpush.msra.mxu0 %v732_v0  ;;  %1595 = vmatpush.msra.mxu1 %v732_v0  ;;  %v726_v12 = vld [vmem:[#allocation9 + $0x40] sm:$0xff]  ;;  %v725_v14 = vld [vmem:[#allocation9 + $0x38] sm:$0xff]  ;;  %v724_v15 = vld [vmem:[#allocation9 + $0x30] sm:$0xff] }
 0x163   : > { %1596 = vmatpush.msra.mxu2 %v732_v0  ;;  %1597 = vmatpush.msra.mxu3 %v732_v0  ;;  %v565_v9 = vmul.f32 %v2366_v6, %v2366_v6  ;;  %v723_v16 = vld [vmem:[#allocation9 + $0x28] sm:$0xff]  ;;  %v722_v18 = vld [vmem:[#allocation9 + $0x20] sm:$0xff]  ;;  %v721_v20 = vld [vmem:[#allocation9 + $0x18] sm:$0xff] }
 0x164   : > { %740 = vmatpush.msra.mxu0 %v731_v1  ;;  %1598 = vmatpush.msra.mxu1 %v731_v1  ;;  %v720_v22 = vld [vmem:[#allocation9 + $0x10] sm:$0xff]  ;;  %v719_v24 = vld [vmem:[#allocation9 + $0x8] sm:$0xff]  ;;  %v718_v26 = vld [vmem:[#allocation9] sm:$0xff] }
 0x165   : > { %1599 = vmatpush.msra.mxu2 %v731_v1  ;;  %1600 = vmatpush.msra.mxu3 %v731_v1  ;;  %v566_v11 = vsub.f32 %v564_v7, %v565_v9  ;;  %v578_v28 = vld [vmem:[%s3167_s24] sm:$0x1]  ;;  %v585_v38 = vld [vmem:[%s2378_s9 + $0x8] sm:$0xff]  ;;  %v586_v50 = vld [vmem:[%s2378_s9 + $0x10] sm:$0xff] }
 0x166   : > { %741 = vmatpush.msra.mxu0 %v730_v2  ;;  %1601 = vmatpush.msra.mxu1 %v730_v2  ;;  %v580_v31 = vld [vmem:[%s3168_s4] sm:$0x1]  ;;  %v593_v39 = vld [vmem:[%s2378_s9 + $0x48] sm:$0xff]  ;;  %v594_v59 = vld [vmem:[%s2378_s9 + $0x50] sm:$0xff] }
 0x167   : > { %1602 = vmatpush.msra.mxu2 %v730_v2  ;;  %1603 = vmatpush.msra.mxu3 %v730_v2  ;;  %v567_v13 = vadd.f32 1e-05, %v566_v11  ;;  %v584_v32 = vld [vmem:[%s2378_s9] sm:$0xff]  ;;  %v589_v44 = vld [vmem:[%s2378_s9 + $0x28] sm:$0xff]  ;;  %v598_v53 = vld [vmem:[%s2378_s9 + $0x70] sm:$0xff] }
 0x168   : > { %742 = vmatpush.msra.mxu0 %v729_v5  ;;  %1604 = vmatpush.msra.mxu1 %v729_v5  ;;  %v588_v34 = vld [vmem:[%s2378_s9 + $0x20] sm:$0xff]  ;;  %v597_v57 = vld [vmem:[%s2378_s9 + $0x68] sm:$0xff] }
 0x169   : > { %1605 = vmatpush.msra.mxu2 %v729_v5  ;;  %1606 = vmatpush.msra.mxu3 %v729_v5  ;;  %1770 = vrsqrt.f32 %v567_v13  ;;  %vm574_vm1 = vweird.f32 %v567_v13  ;;  %v592_v35 = vld [vmem:[%s2378_s9 + $0x40] sm:$0xff] }
 0x16a   : > { %743 = vmatpush.msra.mxu0 %v728_v8  ;;  %1607 = vmatpush.msra.mxu1 %v728_v8  ;;  %v596_v37 = vld [vmem:[%s2378_s9 + $0x60] sm:$0xff] }
 0x16b   : > { %1608 = vmatpush.msra.mxu2 %v728_v8  ;;  %1609 = vmatpush.msra.mxu3 %v728_v8 }
 0x16c   : > { %744 = vmatpush.msra.mxu0 %v727_v10  ;;  %1610 = vmatpush.msra.mxu1 %v727_v10 }
 0x16d   : > { %1611 = vmatpush.msra.mxu2 %v727_v10  ;;  %1612 = vmatpush.msra.mxu3 %v727_v10  ;;  %v587_v10 = vld [vmem:[%s2378_s9 + $0x18] sm:$0xff] }
 0x16e   : > { %745 = vmatpush.msra.mxu0 %v726_v12  ;;  %1613 = vmatpush.msra.mxu1 %v726_v12 }
 0x16f   : > { %1614 = vmatpush.msra.mxu2 %v726_v12  ;;  %1615 = vmatpush.msra.mxu3 %v726_v12  ;;  %v1771_v17 = vpop.eup %1770 }
 0x170   : > { %746 = vmatpush.msra.mxu0 %v725_v14  ;;  %1616 = vmatpush.msra.mxu1 %v725_v14  ;;  %v569_v19 = vmul.f32 %v1771_v17, %v567_v13  ;;  %vm575_vm2 = vweird.f32 %v1771_v17  ;;  %v590_v13 = vld [vmem:[%s2378_s9 + $0x30] sm:$0xff] }
 0x171   : > { %1617 = vmatpush.msra.mxu2 %v725_v14  ;;  %1618 = vmatpush.msra.mxu3 %v725_v14  ;;  %vm576_vm3 = vmor %vm574_vm1, %vm575_vm2 }
 0x172   : > { %747 = vmatpush.msra.mxu0 %v724_v15  ;;  %1619 = vmatpush.msra.mxu1 %v724_v15  ;;  %v570_v21 = vmul.f32 %v1771_v17, %v569_v19  ;;  %v599_v19 = vld [vmem:[%s2378_s9 + $0x78] sm:$0xff] }
 0x173   : > { %1620 = vmatpush.msra.mxu2 %v724_v15  ;;  %1621 = vmatpush.msra.mxu3 %v724_v15  ;;  %v595_v15 = vld [vmem:[%s2378_s9 + $0x58] sm:$0xff] }
 0x174   : > { %748 = vmatpush.msra.mxu0 %v723_v16  ;;  %1622 = vmatpush.msra.mxu1 %v723_v16  ;;  %v571_v23 = vmul.f32 0.5, %v570_v21 }
 0x175   : > { %1623 = vmatpush.msra.mxu2 %v723_v16  ;;  %1624 = vmatpush.msra.mxu3 %v723_v16 }
 0x176   : > { %749 = vmatpush.msra.mxu0 %v722_v18  ;;  %1625 = vmatpush.msra.mxu1 %v722_v18  ;;  %v572_v25 = vsub.f32 1.5, %v571_v23 }
 0x177   : > { %1626 = vmatpush.msra.mxu2 %v722_v18  ;;  %1627 = vmatpush.msra.mxu3 %v722_v18 }
 0x178   : > { %750 = vmatpush.msra.mxu0 %v721_v20  ;;  %1628 = vmatpush.msra.mxu1 %v721_v20  ;;  %v573_v27 = vmul.f32 %v1771_v17, %v572_v25 }
 0x179   : > { %1629 = vmatpush.msra.mxu2 %v721_v20  ;;  %1630 = vmatpush.msra.mxu3 %v721_v20 }
 0x17a   : > { %751 = vmatpush.msra.mxu0 %v720_v22  ;;  %1631 = vmatpush.msra.mxu1 %v720_v22  ;;  %v577_v29 = vsel %vm576_vm3, %v1771_v17, %v573_v27 }
 0x17b   : > { %1632 = vmatpush.msra.mxu2 %v720_v22  ;;  %1633 = vmatpush.msra.mxu3 %v720_v22  ;;  %v579_v30 = vmul.f32 %v578_v28, %v577_v29  ;;  %v591_v28 = vld [vmem:[%s2378_s9 + $0x38] sm:$0xff] }
 0x17c   : > { %752 = vmatpush.msra.mxu0 %v719_v24  ;;  %1634 = vmatpush.msra.mxu1 %v719_v24 }
 0x17d   : > { %1635 = vmatpush.msra.mxu2 %v719_v24  ;;  %1636 = vmatpush.msra.mxu3 %v719_v24  ;;  %v581_v36 = vmul.f32 %v579_v30, %v2366_v6  ;;  %v2384_v33 = vperm.slane %v579_v30, 0 }
 0x17e   : > { %753 = vmatpush.msra.mxu0 %v718_v26  ;;  %1637 = vmatpush.msra.mxu1 %v718_v26 }
 0x17f   : > { %1638 = vmatpush.msra.mxu2 %v718_v26  ;;  %1639 = vmatpush.msra.mxu3 %v718_v26  ;;  %v582_v40 = vsub.f32 %v580_v31, %v581_v36  ;;  %v603_v41 = vmul.f32 %v2384_v33, %v584_v32  ;;  %v607_v42 = vmul.f32 %v2384_v33, %v588_v34 }
 0x180   : > { %v611_v43 = vmul.f32 %v2384_v33, %v592_v35  ;;  %v615_v46 = vmul.f32 %v2384_v33, %v596_v37  ;;  %v604_v47 = vmul.f32 %v2384_v33, %v585_v38  ;;  %v612_v48 = vmul.f32 %v2384_v33, %v593_v39 }
 0x181   : > { %v2396_v49 = vperm.slane %v582_v40, 0  ;;  %v608_v51 = vmul.f32 %v2384_v33, %v589_v44  ;;  %v605_v62 = vmul.f32 %v2384_v33, %v586_v50  ;;  %v616_v2 = vmul.f32 %v2384_v33, %v597_v57 }
 0x182   : > { %v613_v4 = vmul.f32 %v2384_v33, %v594_v59  ;;  %v617_v5 = vmul.f32 %v2384_v33, %v598_v53  ;;  %v606_v18 = vmul.f32 %v2384_v33, %v587_v10  ;;  %v609_v22 = vmul.f32 %v2384_v33, %v590_v13 }
 0x183   : > { %v622_v52 = vadd.f32 %v2396_v49, %v603_v41  ;;  %v626_v54 = vadd.f32 %v2396_v49, %v607_v42  ;;  %v2403_v55 = vadd.f32 %v2396_v49, %v611_v43  ;;  %v2406_v56 = vadd.f32 %v2396_v49, %v615_v46 }
 0x184   : > { %v2410_v45 = vadd.f32 %v2396_v49, %v604_v47  ;;  %v2413_v58 = vadd.f32 %v2396_v49, %v612_v48  ;;  %v2421_v1 = vadd.f32 %v2396_v49, %v608_v51  ;;  %v2429_v7 = vadd.f32 %v2396_v49, %v605_v62 }
 0x185   : > { %v654_v60 = vmul.f32 1.442695, %v622_v52  ;;  %v662_v61 = vmul.f32 1.442695, %v626_v54  ;;  %v670_v63 = vmul.f32 1.442695, %v2403_v55  ;;  %v2433_v9 = vadd.f32 %v2396_v49, %v616_v2 }
 0x186   : > { %v678_v0 = vmul.f32 1.442695, %v2406_v56  ;;  %v656_v3 = vmul.f32 1.442695, %v2410_v45  ;;  %v672_v6 = vmul.f32 1.442695, %v2413_v58  ;;  %v2437_v11 = vadd.f32 %v2396_v49, %v613_v4 }
 0x187   : > { %1772 = vpow2.f32 %v654_v60  ;;  %v664_v8 = vmul.f32 1.442695, %v2421_v1  ;;  %v2440_v12 = vadd.f32 %v2396_v49, %v617_v5  ;;  %vm638_vm4 = vcmp.gt.f32.partialorder %v622_v52, 0.0 }
 0x188   : > { %1774 = vpow2.f32 %v662_v61  ;;  %vm642_vm5 = vcmp.gt.f32.partialorder %v626_v54, 0.0  ;;  %v680_v14 = vmul.f32 1.442695, %v2433_v9  ;;  %vm646_vm6 = vcmp.gt.f32.partialorder %v2403_v55, 0.0 }
 0x189   : > { %1776 = vpow2.f32 %v670_v63  ;;  %vm650_vm7 = vcmp.gt.f32.partialorder %v2406_v56, 0.0  ;;  %v658_v17 = vmul.f32 1.442695, %v2429_v7  ;;  %vm639_vm8 = vcmp.gt.f32.partialorder %v2410_v45, 0.0 }
 0x18a   : > { %1778 = vpow2.f32 %v678_v0  ;;  %v674_v25 = vmul.f32 1.442695, %v2437_v11  ;;  %v614_v26 = vmul.f32 %v2384_v33, %v595_v15  ;;  %v682_v27 = vmul.f32 1.442695, %v2440_v12 }
 0x18b   : > { %1780 = vpow2.f32 %v656_v3  ;;  %v618_v32 = vmul.f32 %v2384_v33, %v599_v19  ;;  %v2460_v37 = vadd.f32 %v2396_v49, %v606_v18  ;;  %v628_v41 = vadd.f32 %v2396_v49, %v609_v22 }
 0x18c   : > { %1782 = vpow2.f32 %v672_v6  ;;  %v610_v42 = vmul.f32 %v2384_v33, %v591_v28  ;;  %vm643_vm9 = vcmp.gt.f32.partialorder %v2421_v1, 0.0  ;;  %v2472_v44 = vadd.f32 %v2396_v49, %v614_v26 }
 0x18d   : > { %v1773_v16 = vpop.eup %1772  ;;  %1784 = vpow2.f32 %v664_v8  ;;  %v666_v48 = vmul.f32 1.442695, %v628_v41  ;;  %v637_v50 = vadd.f32 %v2396_v49, %v618_v32  ;;  %vm647_vm10 = vcmp.gt.f32.partialorder %v2413_v58, 0.0 }
 0x18e   : > { %v1775_v20 = vpop.eup %1774  ;;  %v1474_v21 = vadd.f32 -1.0, %v1773_v16  ;;  %1786 = vpow2.f32 %v680_v14  ;;  %v660_v51 = vmul.f32 1.442695, %v2460_v37  ;;  %vm651_vm11 = vcmp.gt.f32.partialorder %v2433_v9, 0.0 }
 0x18f   : > { %v1777_v23 = vpop.eup %1776  ;;  %v1478_v24 = vadd.f32 -1.0, %v1775_v20  ;;  %1788 = vpow2.f32 %v658_v17  ;;  %v676_v53 = vmul.f32 1.442695, %v2472_v44  ;;  %v684_v61 = vmul.f32 1.442695, %v637_v50 }
 0x190   : > { %v1779_v29 = vpop.eup %1778  ;;  %v702_v30 = vsel %vm638_vm4, %v622_v52, %v1474_v21  ;;  %v1482_v31 = vadd.f32 -1.0, %v1777_v23  ;;  %1790 = vpow2.f32 %v674_v25  ;;  %vm640_vm12 = vcmp.gt.f32.partialorder %v2429_v7, 0.0  ;;  %v1769_v20 = vld [vmem:[%s3169_s1] ss:$0 sm:$0xff] }
 0x191   : > { %v1781_v34 = vpop.eup %1780  ;;  %754 = vmatmul.f32.vlgmr.msra.gmra.mxu0 %v702_v30  ;;  %v706_v35 = vsel %vm642_vm5, %v626_v54, %v1478_v24  ;;  %v1486_v36 = vadd.f32 -1.0, %v1779_v29  ;;  %1792 = vpow2.f32 %v682_v27  ;;  %vm644_vm13 = vcmp.gt.f32.partialorder %v628_v41, 0.0 }
 0x192   : > { %v1783_v38 = vpop.eup %1782  ;;  %766 = vmatmul.f32.vlgmr.msra.gmra.mxu1 %v706_v35  ;;  %v710_v39 = vsel %vm646_vm6, %v2403_v55, %v1482_v31  ;;  %v1475_v40 = vadd.f32 -1.0, %v1781_v34  ;;  %1794 = vpow2.f32 %v666_v48  ;;  %v629_v55 = vadd.f32 %v2396_v49, %v610_v42 }
 0x193   : > { %778 = vmatmul.f32.vlgmr.msra.gmra.mxu2 %v710_v39  ;;  %v714_v43 = vsel %vm650_vm7, %v2406_v56, %v1486_v36  ;;  %v1785_v46 = vpop.eup %1784  ;;  %v1483_v47 = vadd.f32 -1.0, %v1783_v38  ;;  %1796 = vpow2.f32 %v660_v51  ;;  %vm648_vm14 = vcmp.gt.f32.partialorder %v2437_v11, 0.0 }
 0x194   : > { %790 = vmatmul.f32.vlgmr.msra.gmra.mxu3 %v714_v43  ;;  %v1479_v33 = vadd.f32 -1.0, %v1785_v46  ;;  %v1787_v52 = vpop.eup %1786  ;;  %v703_v54 = vsel %vm639_vm8, %v2410_v45, %v1475_v40  ;;  %v668_v62 = vmul.f32 1.442695, %v629_v55  ;;  %vm652_vm15 = vcmp.gt.f32.partialorder %v2440_v12, 0.0 }
 0x195   : > { %v1789_v56 = vpop.eup %1788  ;;  %v1487_v59 = vadd.f32 -1.0, %v1787_v52  ;;  %v711_v60 = vsel %vm647_vm10, %v2413_v58, %v1483_v47  ;;  %vm641_vm0 = vcmp.gt.f32.partialorder %v2460_v37, 0.0  ;;  %vm645_vm1 = vcmp.gt.f32.partialorder %v629_v55, 0.0 }
 0x196   : > { %v707_v57 = vsel %vm643_vm9, %v2421_v1, %v1479_v33  ;;  %v1791_v63 = vpop.eup %1790  ;;  %v1476_v2 = vadd.f32 -1.0, %v1789_v56  ;;  %1798 = vpow2.f32 %v668_v62  ;;  %vm649_vm2 = vcmp.gt.f32.partialorder %v2472_v44, 0.0 }
 0x197   : > { %v715_v45 = vsel %vm651_vm11, %v2433_v9, %v1487_v59  ;;  %v1793_v0 = vpop.eup %1792  ;;  %1800 = vpow2.f32 %v676_v53  ;;  %v1484_v1 = vadd.f32 -1.0, %v1791_v63  ;;  %vm653_vm3 = vcmp.gt.f32.partialorder %v637_v50, 0.0 }
 0x198   : > { %v1795_v49 = vpop.eup %1794  ;;  %1802 = vpow2.f32 %v684_v61  ;;  %v1488_v58 = vadd.f32 -1.0, %v1793_v0  ;;  %v704_v4 = vsel %vm640_vm12, %v2429_v7, %v1476_v2 }
 0x199   : > { %757 = vmatmul.f32.gmra.mxu0 %v703_v54  ;;  %v1480_v3 = vadd.f32 -1.0, %v1795_v49  ;;  %v1797_v5 = vpop.eup %1796  ;;  %v712_v9 = vsel %vm648_vm14, %v2437_v11, %v1484_v1 }
 0x19a   : > { %769 = vmatmul.f32.gmra.mxu1 %v707_v57  ;;  %v716_v13 = vsel %vm652_vm15, %v2440_v12, %v1488_v58  ;;  %v1477_v15 = vadd.f32 -1.0, %v1797_v5 }
 0x19b   : > { %781 = vmatmul.f32.gmra.mxu2 %v711_v60  ;;  %v708_v6 = vsel %vm644_vm13, %v628_v41, %v1480_v3 }
 0x19c   : > { %793 = vmatmul.f32.gmra.mxu3 %v715_v45  ;;  %v1799_v8 = vpop.eup %1798  ;;  %v705_v18 = vsel %vm641_vm0, %v2460_v37, %v1477_v15 }
 0x19d   : > { %v1801_v10 = vpop.eup %1800  ;;  %v1481_v16 = vadd.f32 -1.0, %v1799_v8 }
 0x19e   : > { %v1803_v14 = vpop.eup %1802  ;;  %v1485_v17 = vadd.f32 -1.0, %v1801_v10 }
 0x19f   : > { %v1489_v7 = vadd.f32 -1.0, %v1803_v14  ;;  %v709_v11 = vsel %vm645_vm1, %v629_v55, %v1481_v16 }
 0x1a0   : > { %v713_v19 = vsel %vm649_vm2, %v2472_v44, %v1485_v17 }
 0x1a1   : > { %760 = vmatmul.f32.gmra.mxu0 %v704_v4  ;;  %v717_v12 = vsel %vm653_vm3, %v637_v50, %v1489_v7 }
 0x1a2   : > { %772 = vmatmul.f32.gmra.mxu1 %v708_v6 }
 0x1a3   : > { %784 = vmatmul.f32.gmra.mxu2 %v712_v9 }
 0x1a4   : > { %796 = vmatmul.f32.gmra.mxu3 %v716_v13 }
 0x1a9   : > { %763 = vmatmul.f32.gmra.mxu0 %v705_v18 }
 0x1aa   : > { %775 = vmatmul.f32.gmra.mxu1 %v709_v11 }
 0x1ab   : > { %787 = vmatmul.f32.gmra.mxu2 %v713_v19 }
 0x1ac   : > { %799 = vmatmul.f32.gmra.mxu3 %v717_v12 }
 0x20e   : > { %v755_v21 = vpop.f32.mrf.mxu0 }
 0x20f   : > { %v2501_v22 = vadd.f32 %v1769_v20, %v755_v21  ;;  %v767_v23 = vpop.f32.mrf.mxu1 }
 0x210   : > { %v2503_v24 = vadd.f32 %v1769_v20, %v767_v23 }
 0x211   : > { %v803_v25 = vmul.f32 %v2501_v22, %v2501_v22 }
 0x212   : > { %v807_v26 = vmul.f32 %v2503_v24, %v2503_v24 }
 0x213   : > { %819 = vadd.xlane.f32.xlu0 %v803_v25 }
 0x214   : > { %827 = vadd.xlane.f32.xlu2 %v807_v26 }
 0x216   : > { %v779_v27 = vpop.f32.mrf.mxu2  ;;  %v758_v28 = vpop.f32.mrf.mxu0 }
 0x217   : > { %v2509_v29 = vadd.f32 %v1769_v20, %v779_v27  ;;  %v791_v30 = vpop.f32.mrf.mxu3  ;;  %v770_v34 = vpop.f32.mrf.mxu1  ;;  %v2519_v37 = vadd.f32 %v1769_v20, %v758_v28 }
 0x218   : > { %v2511_v31 = vadd.f32 %v1769_v20, %v791_v30  ;;  %v2517_v36 = vadd.f32 %v1769_v20, %v770_v34 }
 0x219   : > { %v811_v32 = vmul.f32 %v2509_v29, %v2509_v29  ;;  %v804_v44 = vmul.f32 %v2519_v37, %v2519_v37 }
 0x21a   : > { %v815_v35 = vmul.f32 %v2511_v31, %v2511_v31  ;;  %v808_v42 = vmul.f32 %v2517_v36, %v2517_v36 }
 0x21c   : > { %835 = vadd.xlane.f32.xlu2 %v811_v32  ;;  %843 = vadd.xlane.f32.xlu0 %v815_v35 }
 0x21e   : > { %v782_v38 = vpop.f32.mrf.mxu2  ;;  %v761_v39 = vpop.f32.mrf.mxu0 }
 0x21f   : > { %v2521_v40 = vadd.f32 %v1769_v20, %v761_v39  ;;  %v794_v41 = vpop.f32.mrf.mxu3  ;;  %v2529_v46 = vadd.f32 %v1769_v20, %v782_v38  ;;  %v773_v48 = vpop.f32.mrf.mxu1 }
 0x220   : > { %v2539_v56 = vadd.f32 %v1769_v20, %v773_v48  ;;  %v2561_v3 = vadd.f32 %v1769_v20, %v794_v41 }
 0x221   : > { %v805_v43 = vmul.f32 %v2521_v40, %v2521_v40  ;;  %v812_v54 = vmul.f32 %v2529_v46, %v2529_v46 }
 0x222   : > { %v809_v60 = vmul.f32 %v2539_v56, %v2539_v56  ;;  %v816_v4 = vmul.f32 %v2561_v3, %v2561_v3 }
 0x223   : > { %823 = vadd.xlane.f32.xlu1 %v805_v43 }
 0x224   : > { %829 = vadd.xlane.f32.xlu2 %v808_v42  ;;  %821 = vadd.xlane.f32.xlu0 %v804_v44 }
 0x226   : > { %v785_v47 = vpop.f32.mrf.mxu2  ;;  %v764_v51 = vpop.f32.mrf.mxu0 }
 0x227   : > { %v2531_v50 = vadd.f32 %v1769_v20, %v785_v47  ;;  %v797_v33 = vpop.f32.mrf.mxu3  ;;  %v2537_v55 = vadd.f32 %v1769_v20, %v764_v51  ;;  %v776_v61 = vpop.f32.mrf.mxu1 }
 0x228   : > { %v2549_v45 = vadd.f32 %v1769_v20, %v797_v33  ;;  %v2551_v0 = vadd.f32 %v1769_v20, %v776_v61 }
 0x229   : > { %v813_v52 = vmul.f32 %v2531_v50, %v2531_v50  ;;  %v806_v53 = vmul.f32 %v2537_v55, %v2537_v55 }
 0x22a   : > { %v817_v49 = vmul.f32 %v2549_v45, %v2549_v45  ;;  %v810_v1 = vmul.f32 %v2551_v0, %v2551_v0 }
 0x22b   : > { %839 = vadd.xlane.f32.xlu1 %v813_v52 }
 0x22c   : > { %837 = vadd.xlane.f32.xlu0 %v812_v54 }
 0x22e   : > { %v788_v57 = vpop.f32.mrf.mxu2 }
 0x22f   : > { %v2541_v59 = vadd.f32 %v1769_v20, %v788_v57  ;;  %v800_v63 = vpop.f32.mrf.mxu3 }
 0x230   : > { %v2553_v2 = vadd.f32 %v1769_v20, %v800_v63 }
 0x231   : > { %v814_v62 = vmul.f32 %v2541_v59, %v2541_v59 }
 0x232   : > { %v818_v58 = vmul.f32 %v2553_v2, %v2553_v2 }
 0x233   : > { %841 = vadd.xlane.f32.xlu2 %v814_v62  ;;  %825 = vadd.xlane.f32.xlu1 %v806_v53 }
 0x234   : > { %831 = vadd.xlane.f32.xlu0 %v809_v60 }
 0x23b   : > { %847 = vadd.xlane.f32.xlu2 %v817_v49  ;;  %833 = vadd.xlane.f32.xlu1 %v810_v1 }
 0x23c   : > { %849 = vadd.xlane.f32.xlu0 %v818_v58 }
 0x243   : > { %845 = vadd.xlane.f32.xlu1 %v816_v4 }
 0x286   : > { %v820_v5 = vpop.xlane.xlu0 %819 }
 0x287   : > { %v828_v6 = vpop.xlane.xlu2 %827  ;;  %1804 = vrsqrt.f32 %v820_v5  ;;  %vm858_vm4 = vcmp.eq.f32.partialorder %v820_v5, inf  ;;  %vm860_vm5 = vcmp.eq.f32.partialorder %v820_v5, 0.0  ;;  %v861_v35 = vand.u32 2147483648, %v820_v5 }
 0x288   : > { %1806 = vrsqrt.f32 %v828_v6  ;;  %vm906_vm6 = vcmp.eq.f32.partialorder %v828_v6, inf  ;;  %vm908_vm7 = vcmp.eq.f32.partialorder %v828_v6, 0.0  ;;  %v909_v39 = vand.u32 2147483648, %v828_v6 }
 0x28d   : > { %v1805_v8 = vpop.eup %1804 }
 0x28e   : > { %v1807_v9 = vpop.eup %1806  ;;  %v852_v10 = vmul.f32 %v1805_v8, %v820_v5 }
 0x28f   : > { %v900_v13 = vmul.f32 %v1807_v9, %v828_v6  ;;  %v2565_v14 = vpop.xlane.xlu2 %835  ;;  %v2567_v15 = vpop.xlane.xlu0 %843 }
 0x290   : > { %v853_v16 = vmul.f32 %v1805_v8, %v852_v10  ;;  %1808 = vrsqrt.f32 %v2565_v14  ;;  %vm954_vm8 = vcmp.eq.f32.partialorder %v2565_v14, inf  ;;  %v957_v4 = vand.u32 2147483648, %v2565_v14 }
 0x291   : > { %v901_v17 = vmul.f32 %v1807_v9, %v900_v13  ;;  %1810 = vrsqrt.f32 %v2567_v15  ;;  %vm956_vm9 = vcmp.eq.f32.partialorder %v2565_v14, 0.0  ;;  %vm1002_vm10 = vcmp.eq.f32.partialorder %v2567_v15, inf }
 0x292   : > { %v854_v7 = vmul.f32 0.5, %v853_v16  ;;  %vm1004_vm11 = vcmp.eq.f32.partialorder %v2567_v15, 0.0 }
 0x293   : > { %v902_v18 = vmul.f32 0.5, %v901_v17 }
 0x294   : > { %v855_v11 = vsub.f32 1.5, %v854_v7 }
 0x295   : > { %v903_v19 = vsub.f32 1.5, %v902_v18 }
 0x296   : > { %v1809_v12 = vpop.eup %1808  ;;  %v856_v20 = vmul.f32 %v1805_v8, %v855_v11  ;;  %v2571_v21 = vpop.xlane.xlu1 %823 }
 0x297   : > { %v1811_v23 = vpop.eup %1810  ;;  %v904_v25 = vmul.f32 %v1807_v9, %v903_v19  ;;  %v948_v26 = vmul.f32 %v1809_v12, %v2565_v14  ;;  %v2574_v27 = vpop.xlane.xlu2 %829  ;;  %1812 = vrsqrt.f32 %v2571_v21  ;;  %vm882_vm12 = vcmp.eq.f32.partialorder %v2571_v21, inf }
 0x298   : > { %v857_v28 = vmul.f32 %v856_v20, %v820_v5  ;;  %v996_v30 = vmul.f32 %v1811_v23, %v2567_v15  ;;  %1814 = vrsqrt.f32 %v2574_v27  ;;  %v2579_v32 = vpop.xlane.xlu0 %821  ;;  %vm918_vm13 = vcmp.eq.f32.partialorder %v2574_v27, inf }
 0x299   : > { %v905_v34 = vmul.f32 %v904_v25, %v828_v6  ;;  %v949_v38 = vmul.f32 %v1809_v12, %v948_v26  ;;  %1816 = vrsqrt.f32 %v2579_v32  ;;  %vm920_vm14 = vcmp.eq.f32.partialorder %v2574_v27, 0.0 }
 0x29a   : > { %v859_v41 = vsel %vm858_vm4, %v820_v5, %v857_v28  ;;  %v997_v42 = vmul.f32 %v1811_v23, %v996_v30  ;;  %vm884_vm15 = vcmp.eq.f32.partialorder %v2571_v21, 0.0  ;;  %vm870_vm0 = vcmp.eq.f32.partialorder %v2579_v32, inf }
 0x29b   : > { %v907_v43 = vsel %vm906_vm6, %v828_v6, %v905_v34  ;;  %v862_v44 = vsel %vm860_vm5, %v861_v35, %v859_v41  ;;  %v950_v47 = vmul.f32 0.5, %v949_v38  ;;  %v885_v41 = vand.u32 2147483648, %v2571_v21 }
 0x29c   : > { %v910_v48 = vsel %vm908_vm7, %v909_v39, %v907_v43  ;;  %v2582_v33 = vmax.f32 %v862_v44, 1e-30  ;;  %v998_v53 = vmul.f32 0.5, %v997_v42  ;;  %v921_v39 = vand.u32 2147483648, %v2574_v27 }
 0x29d   : > { %v1813_v51 = vpop.eup %1812  ;;  %v2584_v52 = vmax.f32 %v910_v48, 1e-30  ;;  %v951_v54 = vsub.f32 1.5, %v950_v47  ;;  %vm872_vm2 = vcmp.eq.f32.partialorder %v2579_v32, 0.0 }
 0x29e   : > { %v1815_v57 = vpop.eup %1814  ;;  %1818 = vrcp.f32 %v2582_v33  ;;  %v876_v63 = vmul.f32 %v1813_v51, %v2571_v21  ;;  %v2590_v49 = vpop.xlane.xlu1 %839  ;;  %v999_v5 = vsub.f32 1.5, %v998_v53  ;;  %vm1064_vm1 = vweird.f32 %v2582_v33 }
 0x29f   : > { %v952_v60 = vmul.f32 %v1809_v12, %v951_v54  ;;  %v1817_v61 = vpop.eup %1816  ;;  %1820 = vrcp.f32 %v2584_v52  ;;  %v912_v62 = vmul.f32 %v1815_v57, %v2574_v27  ;;  %v873_v54 = vand.u32 2147483648, %v2579_v32 }
 0x2a0   : > { %v864_v58 = vmul.f32 %v1817_v61, %v2579_v32  ;;  %v877_v8 = vmul.f32 %v1813_v51, %v876_v63  ;;  %1822 = vrsqrt.f32 %v2590_v49  ;;  %v1000_v19 = vmul.f32 %v1811_v23, %v999_v5 }
 0x2a1   : > { %v953_v1 = vmul.f32 %v952_v60, %v2565_v14  ;;  %v913_v6 = vmul.f32 %v1815_v57, %v912_v62  ;;  %v1070_v60 = vand.u32 2147483648, %v2582_v33  ;;  %vm1124_vm3 = vweird.f32 %v2584_v52 }
 0x2a2   : > { %v865_v7 = vmul.f32 %v1817_v61, %v864_v58  ;;  %v878_v20 = vmul.f32 0.5, %v877_v8  ;;  %v1001_v35 = vmul.f32 %v1000_v19, %v2567_v15  ;;  %v1128_v5 = vand.u32 2147483647, %v2584_v52 }
 0x2a3   : > { %v955_v10 = vsel %vm954_vm8, %v2565_v14, %v953_v1  ;;  %v914_v16 = vmul.f32 0.5, %v913_v6  ;;  %v1005_v14 = vand.u32 2147483648, %v2567_v15 }
 0x2a4   : > { %v2596_v9 = vpop.eup %1818  ;;  %v958_v13 = vsel %vm956_vm9, %v957_v4, %v955_v10  ;;  %v879_v30 = vsub.f32 1.5, %v878_v20  ;;  %v866_v23 = vmul.f32 0.5, %v865_v7  ;;  %v1003_v62 = vsel %vm1002_vm10, %v2567_v15, %v1001_v35 }
 0x2a5   : > { %v2601_v17 = vmax.f32 %v958_v13, 1e-30  ;;  %v2603_v18 = vpop.eup %1820  ;;  %v1060_v11 = vmul.f32 %v2596_v9, %v2582_v33  ;;  %v915_v12 = vsub.f32 1.5, %v914_v16  ;;  %v1006_v13 = vsel %vm1004_vm11, %v1005_v14, %v1003_v62 }
 0x2a6   : > { %v2611_v26 = vpop.eup %1822  ;;  %v1120_v28 = vmul.f32 %v2603_v18, %v2584_v52  ;;  %v880_v42 = vmul.f32 %v1813_v51, %v879_v30  ;;  %v867_v43 = vsub.f32 1.5, %v866_v23  ;;  %v1068_v51 = vand.u32 2147483647, %v2582_v33 }
 0x2a7   : > { %1824 = vrcp.f32 %v2601_v17  ;;  %v916_v25 = vmul.f32 %v1815_v57, %v915_v12  ;;  %v1061_v34 = vsub.f32 1.0, %v1060_v11  ;;  %v972_v44 = vmul.f32 %v2611_v26, %v2590_v49  ;;  %v2631_v57 = vpop.xlane.xlu0 %837 }
 0x2a8   : > { %v1121_v48 = vsub.f32 1.0, %v1120_v28  ;;  %v881_v58 = vmul.f32 %v880_v42, %v2571_v21  ;;  %v868_v4 = vmul.f32 %v1817_v61, %v867_v43  ;;  %1826 = vrsqrt.f32 %v2631_v57 }
 0x2a9   : > { %v917_v38 = vmul.f32 %v916_v25, %v2574_v27  ;;  %v1062_v53 = vmul.f32 %v2596_v9, %v1061_v34  ;;  %v973_v8 = vmul.f32 %v2611_v26, %v972_v44  ;;  %v1130_v7 = vand.u32 2147483648, %v2584_v52 }
 0x2aa   : > { %v1122_v10 = vmul.f32 %v2603_v18, %v1121_v48  ;;  %v883_v61 = vsel %vm882_vm12, %v2571_v21, %v881_v58  ;;  %v869_v11 = vmul.f32 %v868_v4, %v2579_v32  ;;  %vm1065_vm4 = vweird.f32 %v2596_v9 }
 0x2ab   : > { %v919_v1 = vsel %vm918_vm13, %v2574_v27, %v917_v38  ;;  %v886_v27 = vsel %vm884_vm15, %v885_v41, %v883_v61  ;;  %v974_v19 = vmul.f32 0.5, %v973_v8  ;;  %v1063_v12 = vadd.f32 %v2596_v9, %v1062_v53  ;;  %vm2689_vm8 = vmor %vm1064_vm1, %vm1065_vm4  ;;  %v2735_v8 = vpop.xlane.xlu2 %841 }
 0x2ac   : > { %v922_v6 = vsel %vm920_vm14, %v921_v39, %v919_v1  ;;  %vm2666_vm5 = vcmp.eq.f32.partialorder %v1068_v51, 8.507059e+37  ;;  %v2670_v14 = vmax.f32 %v1006_v13, 1e-30  ;;  %v2672_v25 = vmax.f32 %v886_v27, 1e-30 }
 0x2ad   : > { %v2626_v47 = vpop.eup %1824  ;;  %v2654_v16 = vmax.f32 %v922_v6, 1e-30  ;;  %v871_v21 = vsel %vm870_vm0, %v2579_v32, %v869_v11  ;;  %v1123_v28 = vadd.f32 %v2603_v18, %v1122_v10  ;;  %vm1125_vm6 = vweird.f32 %v2603_v18 }
 0x2ae   : > { %v1180_v63 = vmul.f32 %v2626_v47, %v2601_v17  ;;  %v874_v30 = vsel %vm872_vm2, %v873_v54, %v871_v21  ;;  %v975_v23 = vsub.f32 1.5, %v974_v19  ;;  %v2681_v34 = vpop.eup %1826  ;;  %vm2683_vm7 = vcmp.eq.f32.partialorder %v1128_v5, 8.507059e+37  ;;  %vm2702_vm9 = vmor %vm1124_vm3, %vm1125_vm6 }
 0x2af   : > { %1828 = vrcp.f32 %v2654_v16  ;;  %v1131_v38 = vor.u32 1.1754944e-38, %v1130_v7  ;;  %v1071_v41 = vor.u32 1.1754944e-38, %v1070_v60  ;;  %v1067_v32 = vsel %vm2689_vm8, %v2596_v9, %v1063_v12 }
 0x2b0   : > { %v1181_v15 = vsub.f32 1.0, %v1180_v63  ;;  %1830 = vrcp.f32 %v2672_v25  ;;  %v1188_v43 = vand.u32 2147483647, %v2601_v17  ;;  %v1190_v44 = vand.u32 2147483648, %v2601_v17 }
 0x2b1   : > { %1832 = vrcp.f32 %v2670_v14  ;;  %v2707_v48 = vmax.f32 %v874_v30, 1e-30  ;;  %v976_v54 = vmul.f32 %v2611_v26, %v975_v23  ;;  %v960_v9 = vmul.f32 %v2681_v34, %v2631_v57 }
 0x2b2   : > { %v1182_v42 = vmul.f32 %v2626_v47, %v1181_v15  ;;  %v1127_v51 = vsel %vm2702_vm9, %v2603_v18, %v1123_v28  ;;  %vm978_vm10 = vcmp.eq.f32.partialorder %v2590_v49, inf  ;;  %vm980_vm11 = vcmp.eq.f32.partialorder %v2590_v49, 0.0 }
 0x2b3   : > { %v981_v52 = vand.u32 2147483648, %v2590_v49  ;;  %v1072_v60 = vsel %vm2666_vm5, %v1071_v41, %v1067_v32  ;;  %vm1184_vm12 = vweird.f32 %v2601_v17  ;;  %1834 = vrcp.f32 %v2707_v48 }
 0x2b4   : > { %v1183_v62 = vadd.f32 %v2626_v47, %v1182_v42  ;;  %vm1185_vm13 = vweird.f32 %v2626_v47  ;;  %vm2725_vm14 = vcmp.eq.f32.partialorder %v1188_v43, 8.507059e+37  ;;  %v1191_v63 = vor.u32 1.1754944e-38, %v1190_v44 }
 0x2b5   : > { %v1829_v53 = vpop.eup %1828  ;;  %v1132_v58 = vsel %vm2683_vm7, %v1131_v38, %v1127_v51  ;;  %v977_v5 = vmul.f32 %v976_v54, %v2590_v49  ;;  %v961_v6 = vmul.f32 %v2681_v34, %v960_v9  ;;  %v2738_v10 = vmul.f32 %v1072_v60, %v2501_v22  ;;  %vm2746_vm0 = vmor %vm1184_vm12, %vm1185_vm13 }
 0x2b6   : > { %v1135_v26 = vmul.f32 %v1829_v53, %v2654_v16  ;;  %v2729_v1 = vpop.eup %1830  ;;  %vm1140_vm15 = vweird.f32 %v1829_v53  ;;  %v1143_v13 = vand.u32 2147483647, %v2654_v16  ;;  %v1145_v61 = vand.u32 2147483648, %v2654_v16 }
 0x2b7   : > { %v2742_v7 = vpop.eup %1832  ;;  %v1090_v19 = vmul.f32 %v2729_v1, %v2672_v25  ;;  %v979_v22 = vsel %vm978_vm10, %v2590_v49, %v977_v5  ;;  %v962_v12 = vmul.f32 0.5, %v961_v6  ;;  %v1133_v15 = vmul.f32 %v1132_v58, %v2503_v24 }
 0x2b8   : > { %v1136_v4 = vsub.f32 1.0, %v1135_v26  ;;  %v1187_v20 = vsel %vm2746_vm0, %v2626_v47, %v1183_v62  ;;  %v982_v17 = vsel %vm980_vm11, %v981_v52, %v979_v22  ;;  %1836 = vrsqrt.f32 %v2735_v8  ;;  %v2771_v47 = vpop.xlane.xlu1 %825  ;;  %v2784_v52 = vpop.xlane.xlu0 %831 }
 0x2b9   : > { %v1835_v21 = vpop.eup %1834  ;;  %vm1139_vm1 = vweird.f32 %v2654_v16  ;;  %v2763_v30 = vmax.f32 %v982_v17, 1e-30  ;;  %v963_v23 = vsub.f32 1.5, %v962_v12  ;;  %v2767_v35 = vmul.f32 %v2742_v7, %v2670_v14 }
 0x2ba   : > { %v1137_v11 = vmul.f32 %v1829_v53, %v1136_v4  ;;  %vm1141_vm2 = vmor %vm1139_vm1, %vm1140_vm15  ;;  %vm1144_vm3 = vcmp.eq.f32.partialorder %v1143_v13, 8.507059e+37  ;;  %v1146_v24 = vor.u32 1.1754944e-38, %v1145_v61  ;;  %v1075_v49 = vmul.f32 %v1835_v21, %v2707_v48 }
 0x2bb   : > { %v1192_v38 = vsel %vm2725_vm14, %v1191_v63, %v1187_v20  ;;  %v1091_v16 = vsub.f32 1.0, %v1090_v19  ;;  %1838 = vrcp.f32 %v2763_v30  ;;  %v1098_v32 = vand.u32 2147483647, %v2672_v25 }
 0x2bc   : > { %v1138_v28 = vadd.f32 %v1829_v53, %v1137_v11  ;;  %v1100_v42 = vand.u32 2147483648, %v2672_v25  ;;  %v1076_v43 = vsub.f32 1.0, %v1075_v49  ;;  %v1085_v33 = vand.u32 2147483648, %v2707_v48 }
 0x2bd   : > { %v964_v54 = vmul.f32 %v2681_v34, %v963_v23  ;;  %1840 = vrsqrt.f32 %v2771_v47  ;;  %vm1080_vm4 = vweird.f32 %v1835_v21  ;;  %v1083_v51 = vand.u32 2147483647, %v2707_v48 }
 0x2be   : > { %v1142_v39 = vsel %vm1141_vm2, %v1829_v53, %v1138_v28  ;;  %v1837_v9 = vpop.eup %1836  ;;  %v1077_v53 = vmul.f32 %v1835_v21, %v1076_v43  ;;  %vm966_vm5 = vcmp.eq.f32.partialorder %v2631_v57, inf  ;;  %v1092_v26 = vmul.f32 %v2729_v1, %v1091_v16 }
 0x2bf   : > { %v1147_v41 = vsel %vm1144_vm3, %v1146_v24, %v1142_v39  ;;  %v984_v62 = vmul.f32 %v1837_v9, %v2735_v8  ;;  %vm1079_vm6 = vweird.f32 %v2707_v48  ;;  %vm968_vm7 = vcmp.eq.f32.partialorder %v2631_v57, 0.0 }
 0x2c0   : > { %v1148_v44 = vmul.f32 %v1147_v41, %v2517_v36  ;;  %v965_v36 = vmul.f32 %v964_v54, %v2631_v57  ;;  %v1078_v34 = vadd.f32 %v1835_v21, %v1077_v53  ;;  %v969_v18 = vand.u32 2147483648, %v2631_v57  ;;  %vm1081_vm8 = vmor %vm1079_vm6, %vm1080_vm4  ;;  %v2808_v20 = vpop.xlane.xlu1 %833 }
 0x2c1   : > { %v2792_v63 = vpop.eup %1838  ;;  %v1086_v58 = vor.u32 1.1754944e-38, %v1085_v33  ;;  %v985_v5 = vmul.f32 %v1837_v9, %v984_v62  ;;  %1842 = vrsqrt.f32 %v2784_v52  ;;  %vm1095_vm9 = vweird.f32 %v2729_v1 }
 0x2c2   : > { %v1510_v60 = vpack.c.bf16 %v1148_v44, %v1133_v15  ;;  %v967_v4 = vsel %vm966_vm5, %v2631_v57, %v965_v36  ;;  %v1082_v6 = vsel %vm1081_vm8, %v1835_v21, %v1078_v34  ;;  %vm1084_vm10 = vcmp.eq.f32.partialorder %v1083_v51, 8.507059e+37  ;;  %v2806_v15 = vpop.xlane.xlu2 %847 }
 0x2c3   : > { %v970_v13 = vsel %vm968_vm7, %v969_v18, %v967_v4  ;;  %v1841_v48 = vpop.eup %1840  ;;  %v1093_v61 = vadd.f32 %v2729_v1, %v1092_v26  ;;  %v1087_v27 = vsel %vm1084_vm10, %v1086_v58, %v1082_v6  ;;  %v986_v19 = vmul.f32 0.5, %v985_v5 }
 0x2c4   : > { %1538 = vst [vmem:[%s2299_s15 + $0x10] sm:$0xff] %v1510_v60   ;;  %v2799_v11 = vmax.f32 %v970_v13, 1e-30  ;;  %vm1094_vm11 = vweird.f32 %v2672_v25  ;;  %v1088_v22 = vmul.f32 %v1087_v27, %v2519_v37  ;;  %v1210_v57 = vmul.f32 %v2792_v63, %v2763_v30 }
 0x2c5   : > { %v888_v12 = vmul.f32 %v1841_v48, %v2771_v47  ;;  %v2811_v17 = vmul.f32 %v1192_v38, %v2509_v29  ;;  %vm2813_vm12 = vcmp.eq.f32.partialorder %v1098_v32, 8.507059e+37  ;;  %v1101_v25 = vor.u32 1.1754944e-38, %v1100_v42  ;;  %vm2820_vm13 = vmor %vm1094_vm11, %vm1095_vm9 }
 0x2c6   : > { %1844 = vrcp.f32 %v2799_v11  ;;  %v1500_v28 = vpack.c.bf16 %v1088_v22, %v2738_v10  ;;  %v1220_v23 = vand.u32 2147483648, %v2763_v30  ;;  %v987_v24 = vsub.f32 1.5, %v986_v19 }
 0x2c7   : > { %v889_v29 = vmul.f32 %v1841_v48, %v888_v12  ;;  %v1843_v49 = vpop.eup %1842  ;;  %v1097_v38 = vsel %vm2820_vm13, %v2729_v1, %v1093_v61  ;;  %vm990_vm14 = vcmp.eq.f32.partialorder %v2735_v8, inf  ;;  %vm992_vm15 = vcmp.eq.f32.partialorder %v2735_v8, 0.0  ;;  %v2838_v1 = vpop.xlane.xlu0 %849 }
 0x2c8   : > { %1846 = vrsqrt.f32 %v2806_v15  ;;  %1501 = vst [vmem:[%s2299_s15] sm:$0xff] %v1500_v28   ;;  %v1211_v39 = vsub.f32 1.0, %v1210_v57  ;;  %v988_v16 = vmul.f32 %v1837_v9, %v987_v24  ;;  %v924_v10 = vmul.f32 %v1843_v49, %v2784_v52  ;;  %v2869_v27 = vpop.xlane.xlu1 %845 }
 0x2c9   : > { %v890_v41 = vmul.f32 0.5, %v889_v29  ;;  %vm1214_vm0 = vweird.f32 %v2763_v30  ;;  %v1218_v32 = vand.u32 2147483647, %v2763_v30  ;;  %v993_v42 = vand.u32 2147483648, %v2735_v8 }
 0x2ca   : > { %1848 = vrsqrt.f32 %v2808_v20  ;;  %v2840_v43 = vor.u32 1.1754944e-38, %v1220_v23  ;;  %v989_v44 = vmul.f32 %v988_v16, %v2735_v8  ;;  %v925_v54 = vmul.f32 %v1843_v49, %v924_v10 }
 0x2cb   : > { %v891_v33 = vsub.f32 1.5, %v890_v41  ;;  %v2845_v53 = vsel %vm2813_vm12, %v1101_v25, %v1097_v38  ;;  %vm894_vm1 = vcmp.eq.f32.partialorder %v2771_v47, inf  ;;  %vm896_vm2 = vcmp.eq.f32.partialorder %v2771_v47, 0.0 }
 0x2cc   : > { %v1845_v9 = vpop.eup %1844  ;;  %v897_v51 = vand.u32 2147483648, %v2771_v47  ;;  %v1212_v60 = vmul.f32 %v2792_v63, %v1211_v39  ;;  %v991_v36 = vsel %vm990_vm14, %v2735_v8, %v989_v44  ;;  %1850 = vrsqrt.f32 %v2838_v1 }
 0x2cd   : > { %v1195_v26 = vmul.f32 %v1845_v9, %v2799_v11  ;;  %vm1215_vm3 = vweird.f32 %v2792_v63  ;;  %v994_v34 = vsel %vm992_vm15, %v993_v42, %v991_v36  ;;  %v892_v18 = vmul.f32 %v1841_v48, %v891_v33 }
 0x2ce   : > { %v1847_v62 = vpop.eup %1846  ;;  %v926_v58 = vmul.f32 0.5, %v925_v54  ;;  %vm930_vm4 = vcmp.eq.f32.partialorder %v2784_v52, inf  ;;  %vm2860_vm5 = vcmp.eq.f32.partialorder %v1218_v32, 8.507059e+37  ;;  %v2864_v6 = vmax.f32 %v994_v34, 1e-30  ;;  %vm2888_vm8 = vmor %vm1214_vm0, %vm1215_vm3 }
 0x2cf   : > { %v1196_v5 = vsub.f32 1.0, %v1195_v26  ;;  %vm932_vm6 = vcmp.eq.f32.partialorder %v2784_v52, 0.0  ;;  %v933_v13 = vand.u32 2147483648, %v2784_v52  ;;  %v1020_v61 = vmul.f32 %v1847_v62, %v2806_v15 }
 0x2d0   : > { %v2871_v8 = vpop.eup %1848  ;;  %v1203_v48 = vand.u32 2147483647, %v2799_v11  ;;  %v1205_v19 = vand.u32 2147483648, %v2799_v11  ;;  %v893_v22 = vmul.f32 %v892_v18, %v2771_v47  ;;  %v927_v57 = vsub.f32 1.5, %v926_v58 }
 0x2d1   : > { %v1213_v12 = vadd.f32 %v2792_v63, %v1212_v60  ;;  %v1197_v21 = vmul.f32 %v1845_v9, %v1196_v5  ;;  %vm1200_vm7 = vweird.f32 %v1845_v9  ;;  %1852 = vrcp.f32 %v2864_v6 }
 0x2d2   : > { %v895_v25 = vsel %vm894_vm1, %v2771_v47, %v893_v22  ;;  %v928_v37 = vmul.f32 %v1843_v49, %v927_v57  ;;  %v1021_v28 = vmul.f32 %v1847_v62, %v1020_v61  ;;  %1854 = vrsqrt.f32 %v2869_v27  ;;  %v2882_v23 = vpop.eup %1850 }
 0x2d3   : > { %v1198_v29 = vadd.f32 %v1845_v9, %v1197_v21  ;;  %vm1199_vm9 = vweird.f32 %v2799_v11  ;;  %v898_v38 = vsel %vm896_vm2, %v897_v51, %v895_v25  ;;  %v936_v49 = vmul.f32 %v2871_v8, %v2808_v20 }
 0x2d4   : > { %vm1201_vm10 = vmor %vm1199_vm9, %vm1200_vm7  ;;  %v1206_v39 = vor.u32 1.1754944e-38, %v1205_v19  ;;  %v2897_v16 = vmax.f32 %v898_v38, 1e-30  ;;  %v929_v41 = vmul.f32 %v928_v37, %v2784_v52  ;;  %v1022_v30 = vmul.f32 0.5, %v1021_v28 }
 0x2d5   : > { %v1217_v10 = vsel %vm2888_vm8, %v2792_v63, %v1213_v12  ;;  %v1202_v32 = vsel %vm1201_vm10, %v1845_v9, %v1198_v29  ;;  %vm1204_vm11 = vcmp.eq.f32.partialorder %v1203_v48, 8.507059e+37  ;;  %vm1026_vm12 = vcmp.eq.f32.partialorder %v2806_v15, inf }
 0x2d6   : > { %v1207_v47 = vsel %vm1204_vm11, %v1206_v39, %v1202_v32  ;;  %1856 = vrcp.f32 %v2897_v16  ;;  %vm1028_vm13 = vcmp.eq.f32.partialorder %v2806_v15, 0.0  ;;  %v937_v11 = vmul.f32 %v2871_v8, %v936_v49 }
 0x2d7   : > { %v1032_v42 = vmul.f32 %v2882_v23, %v2838_v1  ;;  %v1853_v44 = vpop.eup %1852  ;;  %v1208_v33 = vmul.f32 %v1207_v47, %v2529_v46  ;;  %v931_v63 = vsel %vm930_vm4, %v2784_v52, %v929_v41  ;;  %v1023_v54 = vsub.f32 1.5, %v1022_v30 }
 0x2d8   : > { %v1029_v9 = vand.u32 2147483648, %v2806_v15  ;;  %v2914_v51 = vpop.eup %1854  ;;  %v1222_v60 = vsel %vm2860_vm5, %v2840_v43, %v1217_v10  ;;  %v1225_v26 = vmul.f32 %v1853_v44, %v2864_v6  ;;  %v1233_v36 = vand.u32 2147483647, %v2864_v6 }
 0x2d9   : > { %v934_v46 = vsel %vm932_vm6, %v933_v13, %v931_v63  ;;  %v1520_v34 = vpack.c.bf16 %v1208_v33, %v2811_v17  ;;  %v1235_v18 = vand.u32 2147483648, %v2864_v6  ;;  %v1024_v5 = vmul.f32 %v1847_v62, %v1023_v54 }
 0x2da   : > { %v2925_v58 = vmax.f32 %v934_v46, 1e-30  ;;  %v1226_v61 = vsub.f32 1.0, %v1225_v26  ;;  %v938_v48 = vmul.f32 0.5, %v937_v11  ;;  %v945_v19 = vand.u32 2147483648, %v2808_v20 }
 0x2db   : > { %v1033_v43 = vmul.f32 %v2882_v23, %v1032_v42  ;;  %v1223_v4 = vmul.f32 %v1222_v60, %v2531_v50  ;;  %1540 = vst [vmem:[%s2299_s15 + $0x20] sm:$0xff] %v1520_v34   ;;  %vm1230_vm14 = vweird.f32 %v1853_v44  ;;  %vm942_vm15 = vcmp.eq.f32.partialorder %v2808_v20, inf }
 0x2dc   : > { %1858 = vrcp.f32 %v2925_v58  ;;  %v1008_v52 = vmul.f32 %v2914_v51, %v2869_v27  ;;  %v1857_v17 = vpop.eup %1856  ;;  %v1227_v13 = vmul.f32 %v1853_v44, %v1226_v61  ;;  %v1025_v62 = vmul.f32 %v1024_v5, %v2806_v15 }
 0x2dd   : > { %v939_v22 = vsub.f32 1.5, %v938_v48  ;;  %vm944_vm0 = vcmp.eq.f32.partialorder %v2808_v20, 0.0  ;;  %v1034_v57 = vmul.f32 0.5, %v1033_v43  ;;  %vm1229_vm1 = vweird.f32 %v2864_v6 }
 0x2de   : > { %vm2938_vm2 = vcmp.eq.f32.partialorder %v1233_v36, 8.507059e+37  ;;  %v1236_v12 = vor.u32 1.1754944e-38, %v1235_v18  ;;  %v1105_v21 = vmul.f32 %v1857_v17, %v2897_v16  ;;  %v1228_v25 = vadd.f32 %v1853_v44, %v1227_v13  ;;  %vm1231_vm3 = vmor %vm1229_vm1, %vm1230_vm14 }
 0x2df   : > { %v1027_v37 = vsel %vm1026_vm12, %v2806_v15, %v1025_v62  ;;  %v940_v28 = vmul.f32 %v2871_v8, %v939_v22  ;;  %v1035_v24 = vsub.f32 1.5, %v1034_v57  ;;  %v1115_v6 = vand.u32 2147483648, %v2897_v16 }
 0x2e0   : > { %v1106_v29 = vsub.f32 1.0, %v1105_v21  ;;  %v1030_v38 = vsel %vm1028_vm13, %v1029_v9, %v1027_v37  ;;  %v1009_v49 = vmul.f32 %v2914_v51, %v1008_v52  ;;  %v1232_v39 = vsel %vm1231_vm3, %v1853_v44, %v1228_v25 }
 0x2e1   : > { %v2952_v41 = vmax.f32 %v1030_v38, 1e-30  ;;  %v941_v30 = vmul.f32 %v940_v28, %v2808_v20  ;;  %v1036_v10 = vmul.f32 %v2882_v23, %v1035_v24  ;;  %v1237_v8 = vsel %vm2938_vm2, %v1236_v12, %v1232_v39 }
 0x2e2   : > { %v2956_v32 = vpop.eup %1858  ;;  %v1107_v47 = vmul.f32 %v1857_v17, %v1106_v29  ;;  %vm1110_vm4 = vweird.f32 %v1857_v17  ;;  %v1113_v11 = vand.u32 2147483647, %v2897_v16  ;;  %v1238_v15 = vmul.f32 %v1237_v8, %v2541_v59 }
 0x2e3   : > { %v1150_v42 = vmul.f32 %v2956_v32, %v2925_v58  ;;  %1860 = vrcp.f32 %v2952_v41  ;;  %vm1038_vm5 = vcmp.eq.f32.partialorder %v2838_v1, inf  ;;  %vm1109_vm6 = vweird.f32 %v2897_v16 }
 0x2e4   : > { %v1108_v23 = vadd.f32 %v1857_v17, %v1107_v47  ;;  %vm1040_vm7 = vcmp.eq.f32.partialorder %v2838_v1, 0.0  ;;  %v1010_v44 = vmul.f32 0.5, %v1009_v49  ;;  %v1525_v33 = vpack.c.bf16 %v1238_v15, %v1223_v4  ;;  %vm1111_vm8 = vmor %vm1109_vm6, %vm1110_vm4 }
 0x2e5   : > { %v1116_v63 = vor.u32 1.1754944e-38, %v1115_v6  ;;  %v943_v59 = vsel %vm942_vm15, %v2808_v20, %v941_v30  ;;  %v1037_v54 = vmul.f32 %v1036_v10, %v2838_v1  ;;  %vm1114_vm9 = vcmp.eq.f32.partialorder %v1113_v11, 8.507059e+37 }
 0x2e6   : > { %v1112_v9 = vsel %vm1111_vm8, %v1857_v17, %v1108_v23  ;;  %v946_v60 = vsel %vm944_vm0, %v945_v19, %v943_v59  ;;  %v1041_v26 = vand.u32 2147483648, %v2838_v1  ;;  %1541 = vst [vmem:[%s2299_s15 + $0x28] sm:$0xff] %v1525_v33   ;;  %v1151_v36 = vsub.f32 1.0, %v1150_v42 }
 0x2e7   : > { %v1117_v16 = vsel %vm1114_vm9, %v1116_v63, %v1112_v9  ;;  %v1050_v46 = vmax.f32 %v946_v60, 1e-30  ;;  %v1039_v34 = vsel %vm1038_vm5, %v2838_v1, %v1037_v54  ;;  %v1103_v18 = vmul.f32 %v2845_v53, %v2521_v40 }
 0x2e8   : > { %v1118_v5 = vmul.f32 %v1117_v16, %v2537_v55  ;;  %v1042_v20 = vsel %vm1040_vm7, %v1041_v26, %v1039_v34  ;;  %v1011_v61 = vsub.f32 1.5, %v1010_v44  ;;  %v1241_v4 = vsub.f32 1.0, %v2767_v35 }
 0x2e9   : > { %v2984_v48 = vpop.eup %1860  ;;  %1862 = vrcp.f32 %v1050_v46  ;;  %v1152_v52 = vmul.f32 %v2956_v32, %v1151_v36  ;;  %v2990_v17 = vmax.f32 %v1042_v20, 1e-30  ;;  %v1158_v1 = vand.u32 2147483647, %v2925_v58 }
 0x2ea   : > { %v1505_v19 = vpack.c.bf16 %v1118_v5, %v1103_v18  ;;  %v1270_v43 = vmul.f32 %v2984_v48, %v2952_v41  ;;  %v1012_v40 = vmul.f32 %v2914_v51, %v1011_v61  ;;  %v1160_v53 = vand.u32 2147483648, %v2925_v58 }
 0x2eb   : > { %1864 = vrcp.f32 %v2990_v17  ;;  %v1242_v22 = vmul.f32 %v2742_v7, %v1241_v4  ;;  %v1153_v35 = vadd.f32 %v2956_v32, %v1152_v52  ;;  %vm1155_vm10 = vweird.f32 %v2956_v32 }
 0x2ec   : > { %1537 = vst [vmem:[%s2299_s15 + $0x8] sm:$0xff] %v1505_v19   ;;  %v1271_v55 = vsub.f32 1.0, %v1270_v43  ;;  %v1013_v13 = vmul.f32 %v1012_v40, %v2869_v27  ;;  %vm1014_vm11 = vcmp.eq.f32.partialorder %v2869_v27, inf  ;;  %v1017_v50 = vand.u32 2147483648, %v2869_v27 }
 0x2ed   : > { %vm1154_vm12 = vweird.f32 %v2925_v58  ;;  %vm3005_vm13 = vcmp.eq.f32.partialorder %v1158_v1, 8.507059e+37  ;;  %vm1016_vm14 = vcmp.eq.f32.partialorder %v2869_v27, 0.0  ;;  %v1161_v37 = vor.u32 1.1754944e-38, %v1160_v53 }
 0x2ee   : > { %v1272_v57 = vmul.f32 %v2984_v48, %v1271_v55  ;;  %v1015_v21 = vsel %vm1014_vm11, %v2869_v27, %v1013_v13  ;;  %vm3011_vm15 = vmor %vm1154_vm12, %vm1155_vm10  ;;  %v1173_v24 = vand.u32 2147483647, %v1050_v46  ;;  %vm1275_vm0 = vweird.f32 %v2984_v48 }
 0x2ef   : > { %v1863_v62 = vpop.eup %1862  ;;  %v1018_v29 = vsel %vm1016_vm14, %v1017_v50, %v1015_v21  ;;  %v1157_v58 = vsel %vm3011_vm15, %v2956_v32, %v1153_v35  ;;  %v1175_v38 = vand.u32 2147483648, %v1050_v46  ;;  %vm1274_vm2 = vweird.f32 %v2952_v41 }
 0x2f0   : > { %v1165_v51 = vmul.f32 %v1863_v62, %v1050_v46  ;;  %v3019_v49 = vmax.f32 %v1018_v29, 1e-30  ;;  %v1273_v27 = vadd.f32 %v2984_v48, %v1272_v57  ;;  %vm1170_vm1 = vweird.f32 %v1863_v62  ;;  %vm3027_vm3 = vmor %vm1274_vm2, %vm1275_vm0 }
 0x2f1   : > { %v1865_v6 = vpop.eup %1864  ;;  %v1278_v10 = vand.u32 2147483647, %v2952_v41  ;;  %v1280_v8 = vand.u32 2147483648, %v2952_v41  ;;  %vm1169_vm4 = vweird.f32 %v1050_v46  ;;  %vm1174_vm5 = vcmp.eq.f32.partialorder %v1173_v24, 8.507059e+37 }
 0x2f2   : > { %v1166_v28 = vsub.f32 1.0, %v1165_v51  ;;  %v1285_v30 = vmul.f32 %v1865_v6, %v2990_v17  ;;  %1866 = vrcp.f32 %v3019_v49  ;;  %v1162_v15 = vsel %vm3005_vm13, %v1161_v37, %v1157_v58  ;;  %vm1171_vm6 = vmor %vm1169_vm4, %vm1170_vm1 }
 0x2f3   : > { %v1176_v42 = vor.u32 1.1754944e-38, %v1175_v38  ;;  %v1293_v23 = vand.u32 2147483647, %v2990_v17  ;;  %v1295_v44 = vand.u32 2147483648, %v2990_v17  ;;  %v1277_v41 = vsel %vm3027_vm3, %v2984_v48, %v1273_v27 }
 0x2f4   : > { %v1167_v39 = vmul.f32 %v1863_v62, %v1166_v28  ;;  %v1286_v11 = vsub.f32 1.0, %v1285_v30  ;;  %vm1290_vm7 = vweird.f32 %v1865_v6  ;;  %vm1279_vm8 = vcmp.eq.f32.partialorder %v1278_v10, 8.507059e+37 }
 0x2f5   : > { %v1281_v59 = vor.u32 1.1754944e-38, %v1280_v8  ;;  %v1163_v9 = vmul.f32 %v1162_v15, %v2539_v56  ;;  %vm1289_vm9 = vweird.f32 %v2990_v17  ;;  %v1243_v36 = vadd.f32 %v2742_v7, %v1242_v22 }
 0x2f6   : > { %v1168_v47 = vadd.f32 %v1863_v62, %v1167_v39  ;;  %v1287_v63 = vmul.f32 %v1865_v6, %v1286_v11  ;;  %vm1245_vm10 = vweird.f32 %v2742_v7  ;;  %vm1291_vm11 = vmor %vm1289_vm9, %vm1290_vm7  ;;  %v1296_v34 = vor.u32 1.1754944e-38, %v1295_v44 }
 0x2f7   : > { %v1282_v46 = vsel %vm1279_vm8, %v1281_v59, %v1277_v41  ;;  %vm1294_vm12 = vcmp.eq.f32.partialorder %v1293_v23, 8.507059e+37  ;;  %vm1244_vm13 = vweird.f32 %v2670_v14  ;;  %v1250_v56 = vand.u32 2147483648, %v2670_v14 }
 0x2f8   : > { %v1172_v33 = vsel %vm1171_vm6, %v1863_v62, %v1168_v47  ;;  %v1288_v26 = vadd.f32 %v1865_v6, %v1287_v63  ;;  %v1867_v16 = vpop.eup %1866  ;;  %vm3046_vm14 = vmor %vm1244_vm13, %vm1245_vm10  ;;  %v1248_v48 = vand.u32 2147483647, %v2670_v14  ;;  %v1283_v19 = vmul.f32 %v1282_v46, %v2549_v45 }
 0x2f9   : > { %v1177_v54 = vsel %vm1174_vm5, %v1176_v42, %v1172_v33  ;;  %v1255_v20 = vmul.f32 %v1867_v16, %v3019_v49  ;;  %v1247_v52 = vsel %vm3046_vm14, %v2742_v7, %v1243_v36  ;;  %v1265_v17 = vand.u32 2147483648, %v3019_v49 }
 0x2fa   : > { %v1178_v60 = vmul.f32 %v1177_v54, %v2551_v0  ;;  %v1292_v5 = vsel %vm1291_vm11, %v1865_v6, %v1288_v26  ;;  %vm1260_vm15 = vweird.f32 %v1867_v16  ;;  %v1263_v1 = vand.u32 2147483647, %v3019_v49 }
 0x2fb   : > { %v1297_v0 = vsel %vm1294_vm12, %v1296_v34, %v1292_v5  ;;  %v1256_v4 = vsub.f32 1.0, %v1255_v20  ;;  %v1251_v53 = vor.u32 1.1754944e-38, %v1250_v56  ;;  %vm1249_vm0 = vcmp.eq.f32.partialorder %v1248_v48, 8.507059e+37 }
 0x2fc   : > { %v1515_v18 = vpack.c.bf16 %v1178_v60, %v1163_v9  ;;  %v1298_v43 = vmul.f32 %v1297_v0, %v2553_v2  ;;  %vm1259_vm1 = vweird.f32 %v3019_v49  ;;  %v1266_v14 = vor.u32 1.1754944e-38, %v1265_v17 }
 0x2fd   : > { %v1257_v55 = vmul.f32 %v1867_v16, %v1256_v4  ;;  %v1252_v2 = vsel %vm1249_vm0, %v1251_v53, %v1247_v52  ;;  %vm1261_vm2 = vmor %vm1259_vm1, %vm1260_vm15  ;;  %vm1264_vm3 = vcmp.eq.f32.partialorder %v1263_v1, 8.507059e+37 }
 0x2fe   : > { %1539 = vst [vmem:[%s2299_s15 + $0x18] sm:$0xff] %v1515_v18   ;;  %v1535_v40 = vpack.c.bf16 %v1298_v43, %v1283_v19  ;;  %v1253_v62 = vmul.f32 %v1252_v2, %v2511_v31 }
 0x2ff   : > { %v1258_v45 = vadd.f32 %v1867_v16, %v1257_v55 }
 0x300   : > { %1543 = vst [vmem:[%s2299_s15 + $0x38] sm:$0xff] %v1535_v40  }
 0x301   : > { %v1262_v13 = vsel %vm1261_vm2, %v1867_v16, %v1258_v45 }
 0x302   : > { %v1267_v7 = vsel %vm1264_vm3, %v1266_v14, %v1262_v13 }
 0x303   : > { %v1268_v22 = vmul.f32 %v1267_v7, %v2561_v3 }
 0x305   : > { %v1530_v35 = vpack.c.bf16 %v1268_v22, %v1253_v62 }
 0x307   : > { %1542 = vst [vmem:[%s2299_s15 + $0x30] sm:$0xff] %v1530_v35  }
 0x308 PF: > { %s3200_s13 = sld [smem:[#allocation15_spill]]  ;;  %s1345_s5 = sshll.u32 %s2299_s15, 4  ;;  %s1346_s5 = int_to_ptr.vmem [resolvable:$true] %s1345_s5 }
 0x309   : > { %s3202_s19 = sld [smem:[#allocation28_spill]]  ;;  %s1332_s6 = scalar_lea.sflag [#allocation6], %s355_s27 }
 0x30e   : > { %s1339_s22 = smul.u32 %s2068_s30, %s3200_s13 }
 0x30f   : > { %s1978_s15 = scalar_lea.hbm %s3202_s19, 256 }
 0x310   : > { %s1496_s14 = sshll.u32 %s1339_s22, 6 }
 0x311   : > { %s1344_s20 = scalar_lea.hbm %s3202_s19, %s1496_s14 }
 0x312   : > { %s1347_s7 = sshll.u32 %s1344_s20, 4  ;;  %s1348_s7 = int_to_ptr.hbm [resolvable:$true] %s1347_s7 }
 0x313   : > { %s1972_s16 = sshra.s32 %s1348_s7, 4  ;;  %s1973_s16 = int_to_ptr.hbm [resolvable:$true] %s1972_s16 }
 0x314   : > { %s1974_s24 = scalar_lea.hbm %s1973_s16, 64  ;;  %p1979_p3 = scmp.lt.s32.totalorder %s1973_s16, %s3202_s19 }
 0x315   : > { %p1975_p13 = scmp.ne.s32.totalorder %s1973_s16, %s1974_s24  ;;  %p1980_p5 = scmp.lt.s32.totalorder %s1978_s15, %s1974_s24 }
 0x317   : > { %p1976_p0 = pnand %p1975_p13, %p2203_p6  ;;  %p1981_p9 = por %p1980_p5, %p1979_p3 }
 0x319   : > { %p1977_p2 = pneg %p1976_p0 }
 0x31b   : > { %p1982_p12 = pnand %p1981_p9, %p1977_p2 }
 0x31d   : > { %1985 = shalt.err (!%p1982_p12)
}
 0x31e   : > { %s2091_s27 = smov 64   ;;  %s2092_s9 = smov 4  }
 0x31f   : > { %1650 = dma.vmem_to_hbm [thread:$0]  (%p2203_p6), %s1346_s5, 1024, %s1348_s7, %s1332_s6, %s2091_s27, %s2091_s27, %s2092_s9  }
 0x320 PF: > { %s3203_s10 = sld [smem:[#allocation14_spill]]  ;;  %p1672_p11 = scmp.ge.s32.totalorder %s2084_s11, 2 }
 0x322   : > { %p1664_p7 = pnand %p1672_p11, %p2209_p10 }
 0x324   : > { %p1665_p8 = pneg %p1664_p7 }
 0x326   : > { %s1362_s1 = sand.u32 1, %s3203_s10  }
 0x327   : > { %s1363_s13 = scalar_lea.sflag [#allocation6], %s1362_s1 }
 0x328   : > { %2039 = dma.done.wait (%p1665_p8), %s1363_s13, 1024  }
 0x329   : > { %2041 = vsyncadd (%p1665_p8), %s1363_s13, 4294966272  ;;  %s24_s11 = sadd.s32 1, %s2084_s11   ;;  %s3205_s30 = sld [smem:[#allocation16_spill]] }
 0x32a   : > { %p21_p1 = scmp.ge.s32.totalorder %s24_s11, 10   ;;  %s3206_s8 = sld [smem:[#allocation17_spill]] }
 0x32b   : > { %s3207_s9 = sld [smem:[#allocation20_spill]]  ;;  %s3209_s24 = smov %s2048_s25 }
 0x32c   : > { %s3208_s10 = sld [smem:[#allocation21_spill]]  ;;  %s3210_s25 = smov %s2052_s26 }
 0x32d   : > { %s3211_s26 = smov %s2265_s2  ;;  %s3212_s27 = smov %s2060_s28 }
 0x32e   : > { %s3213_s28 = smov %s2064_s29  ;;  %s3214_s29 = smov %s2262_s3 }
 0x32f   :  { %23 = sbr.rel (!%p21_p1) target bundleno = 18 (0x12), region = 115 }
 0x334   :  { %1369 = vsyncpa [#allocation5], 1 }
 0x335   :  { %1371 = vsyncpa [#allocation5 + $0x1], 1 }
 0x336   :  { %1372 = vsyncpa [#allocation8], 1 }
 0x337   :  { %1373 = vsyncpa [#allocation6], 1 }
 0x338   :  { %1375 = vsyncpa [#allocation6 + $0x1], 1 }

</bundles_post_ra>
